<compile_context>
chip_gen: v6e
topology: v6e:2x2x1
jax: 0.10.0
libtpu: 0.0.40
codegen_flags: <defaults>
</compile_context>

<pallas_src>
import math
from functools import partial

import jax
import jax.numpy as jnp
from jax.experimental import pallas as pl
from jax.experimental.pallas import tpu as pltpu


def _mha_kernel(x_ref, w_ref, b_ref, out_ref, attn_ref=None, *,
                n_heads: int, n_batch: int, mxu_bf16: bool):
    """Full multi-head self-attention in one grid step.

    x_ref:    (n_batch*L, E)  activations, batch folded into the sublane/M axis
    w_ref:    (E, 4E)         packed, pre-transposed weights [Wq^T*s | Wk^T | Wv^T | Wo^T]
    b_ref:    (1, 4E)         packed biases [bq*s | bk | bv | bo]
    out_ref:  (L, n_batch, E) output already in the PyTorch (L, N, E) layout
    attn_ref: (n_batch, L, L) optional head-averaged attention weights
    """
    f32 = jnp.float32
    mmt = jnp.bfloat16 if mxu_bf16 else f32           # MXU operand dtype

    x = x_ref[...]                                    # (ML, E)
    ML, E = x.shape
    L = ML // n_batch
    hd = E // n_heads
    E3 = 3 * E

    w = w_ref[...].astype(f32)                        # (E, 4E)
    b = b_ref[...].astype(f32)                        # (1, 4E)
    wo = w[:, E3:]                                    # (E, E), pre-transposed out-proj

    # Fused QKV projection: a single (ML, E) @ (E, 3E) MXU matmul, f32 accumulation.
    qkv = jnp.dot(x.astype(mmt), w[:, :E3].astype(mmt),
                  preferred_element_type=f32) + b[:, :E3]          # (ML, 3E)

    # (ML, 3E) -> three (n_batch, L, E): leading-dim split + static lane slices only.
    q3 = qkv[:, :E].reshape(n_batch, L, E)            # already scaled by 1/sqrt(hd)
    k3 = qkv[:, E:2 * E].reshape(n_batch, L, E)
    v3 = qkv[:, 2 * E:].reshape(n_batch, L, E)

    acc = jnp.zeros((ML, E), f32)                     # output-projection accumulator
    inv_h = 1.0 / n_heads

    # Per-head attention; score / context matmuls are batched over the batch axis.
    for h in range(n_heads):                          # static unroll (n_heads small)
        lo = h * hd
        qh = q3[:, :, lo:lo + hd]                     # (n_batch, L, hd)
        kh = k3[:, :, lo:lo + hd]
        vh = v3[:, :, lo:lo + hd]

        s = jnp.einsum('nld,nmd->nlm', qh.astype(mmt), kh.astype(mmt),
                       preferred_element_type=f32)    # (n_batch, L, L)
        s = s - jnp.max(s, axis=-1, keepdims=True)    # numerically stable softmax (f32)
        e = jnp.exp(s)
        denom = jnp.sum(e, axis=-1, keepdims=True)

        if attn_ref is not None:
            # Exact divide here: returned attention rows sum to 1.  Accumulate the head
            # average directly into the output ref (no carried accumulator value).
            p = e / denom
            if h == 0:
                attn_ref[...] = (p * inv_h).astype(attn_ref.dtype)
            else:
                attn_ref[...] += (p * inv_h).astype(attn_ref.dtype)
        else:
            p = e * pl.reciprocal(denom, approx=True)  # EUP slot, fast path only

        oh = jnp.einsum('nlm,nmd->nld', p.astype(mmt), vh.astype(mmt),
                        preferred_element_type=f32)    # (n_batch, L, hd)
        # Fold this head's output straight into the output projection (no concatenate).
        acc = acc + jnp.dot(oh.reshape(ML, hd).astype(mmt),
                            wo[lo:lo + hd, :].astype(mmt),
                            preferred_element_type=f32)

    out = acc + b[:, E3:]                              # (ML, E) = (n_batch*L, E)
    # Write directly in the final PyTorch (L, N, E) layout: two static per-batch stores.
    for n in range(n_batch):
        out_ref[:, n:n + 1, :] = out[n * L:(n + 1) * L, :].reshape(L, 1, E).astype(out_ref.dtype)


@partial(jax.jit, static_argnames=("n_heads", "output_attention", "mxu_bf16"))
def self_attention_forward(x, params, *, n_heads, output_attention=False, mxu_bf16=False):
    """x: (S, E, N) with S == E == d_model (forced by the module's attn_mask shape).

    params = (in_proj_weight (3E,E), in_proj_bias (3E,), out_proj.weight (E,E), out_proj.bias (E,))
    Returns (out (L, N, E), attn (N, L, L) or None), matching the PyTorch module output.
    """
    S, E, N = x.shape
    assert S == E, "the (d_model, d_model) attn_mask forces seq_len == d_model"
    assert E % n_heads == 0
    hd = E // n_heads
    scale = 1.0 / math.sqrt(hd)

    wqkv, bqkv, wo, bo = params
    # Packed parameter prep (fused into this jit program; hoisted/constant-folded if the
    # caller jits the surrounding model): W = [Wq^T*scale | Wk^T | Wv^T | Wo^T] -> (E, 4E),
    # b = [bq*scale | bk | bv | bo] -> (1, 4E).
    w_pack = jnp.concatenate(
        [jnp.transpose(wqkv[:E]) * scale,
         jnp.transpose(wqkv[E:2 * E]),
         jnp.transpose(wqkv[2 * E:]),
         jnp.transpose(wo)], axis=1).astype(x.dtype)                  # (E, 4E)
    b_pack = jnp.concatenate(
        [bqkv[:E] * scale, bqkv[E:2 * E], bqkv[2 * E:], bo]).reshape(1, 4 * E).astype(jnp.float32)

    # Single layout change on the input: (S, E, N) -> (N, L, E) -> (N*L, E).
    x_flat = jnp.transpose(x, (2, 0, 1)).reshape(N * S, E)

    kernel = partial(_mha_kernel, n_heads=n_heads, n_batch=N, mxu_bf16=mxu_bf16)

    full = lambda i: (0, 0)
    in_specs = [
        pl.BlockSpec((N * S, E), full),       # x_flat
        pl.BlockSpec((E, 4 * E), full),       # packed weights (lane-dense (32,128))
        pl.BlockSpec((1, 4 * E), full),       # packed biases
    ]
    out_specs = [pl.BlockSpec((S, N, E), lambda i: (0, 0, 0))]        # final (L,N,E) layout
    out_shape = [jax.ShapeDtypeStruct((S, N, E), x.dtype)]
    if output_attention:
        out_specs.append(pl.BlockSpec((N, S, S), lambda i: (0, 0, 0)))
        out_shape.append(jax.ShapeDtypeStruct((N, S, S), jnp.float32))

    res = pl.pallas_call(
        kernel,
        grid=(1,),                            # whole problem in one step at this size
        in_specs=in_specs,
        out_specs=out_specs,
        out_shape=out_shape,
        compiler_params=pltpu.CompilerParams(dimension_semantics=("arbitrary",)),
    )(x_flat, w_pack, b_pack)

    out = res[0]                              # already (L, N, E); no post-kernel transpose
    attn = res[1] if output_attention else None
    return out, attn


def _reference(x, params, n_heads):
    """Pure-JAX reference of nn.MultiheadAttention forward (eval, all-False mask)."""
    wqkv, bqkv, wo, bo = params
    S, E, N = x.shape
    hd = E // n_heads
    x_t = jnp.swapaxes(x, -1, -2)                               # (L, N, E)
    qkv = jnp.einsum('lne,fe->lnf', x_t, wqkv) + bqkv           # (L, N, 3E)
    q, k, v = jnp.split(qkv, 3, axis=-1)

    def to_heads(t):                                            # (L, N, E) -> (N, H, L, hd)
        return jnp.transpose(t.reshape(S, N, n_heads, hd), (1, 2, 0, 3))

    qh, kh, vh = to_heads(q), to_heads(k), to_heads(v)
    s = jnp.einsum('nhld,nhmd->nhlm', qh, kh) / math.sqrt(hd)
    p = jax.nn.softmax(s, axis=-1)
    o = jnp.einsum('nhlm,nhmd->nhld', p, vh)
    o = jnp.transpose(o, (2, 0, 1, 3)).reshape(S, N, E)
    out = jnp.einsum('lne,fe->lnf', o, wo) + bo
    attn = jnp.mean(p, axis=1)                                  # (N, L, L)
    return out, attn


if __name__ == "__main__":
    d_model = 32
    n_heads = 4
    batch = 2
    seq = d_model          # forced equal to d_model by the module's attn_mask shape
    # dropout=0.1 in the module -> no-op at eval time (implemented as eval).

    key = jax.random.PRNGKey(0)
    k1, k2, k3, k4, k5 = jax.random.split(key, 5)
    wqkv = jax.random.normal(k1, (3 * d_model, d_model), jnp.float32) / math.sqrt(d_model)
    bqkv = jax.random.normal(k2, (3 * d_model,), jnp.float32) * 0.02
    wo = jax.random.normal(k3, (d_model, d_model), jnp.float32) / math.sqrt(d_model)
    bo = jax.random.normal(k4, (d_model,), jnp.float32) * 0.02
    params = (wqkv, bqkv, wo, bo)

    x = jax.random.normal(k5, (seq, d_model, batch), jnp.float32)

    # Path 1: with attention weights (exact softmax divide, f32 MXU operands).
    out, attn = self_attention_forward(x, params, n_heads=n_heads, output_attention=True)
    out = jax.block_until_ready(out)
    attn = jax.block_until_ready(attn)

    # Path 2: fast path — no attention-weights output, bf16 MXU operands, approx reciprocal.
    out_fast, attn_none = self_attention_forward(
        x, params, n_heads=n_heads, output_attention=False, mxu_bf16=True)
    out_fast = jax.block_until_ready(out_fast)

    ref_out, ref_attn = _reference(x, params, n_heads)
    assert out.shape == (seq, batch, d_model)
    assert attn.shape == (batch, seq, seq)
    assert attn_none is None
    assert jnp.allclose(out, ref_out, atol=2e-2, rtol=2e-2)
    assert jnp.allclose(attn, ref_attn, atol=2e-2, rtol=2e-2)
    # bf16 MXU operands + approx softmax reciprocal on the fast path -> looser tolerance.
    assert jnp.allclose(out_fast, ref_out, atol=6e-2, rtol=6e-2)

    print("KERNEL_OK")
</pallas_src>

<mosaic_0001>
module attributes {stable_mosaic.version = 11 : i64} {
  func.func @_mha_kernel(%arg0: i32, %arg1: memref<64x32xf32, #tpu.memory_space<vmem>>, %arg2: memref<32x128xf32, #tpu.memory_space<vmem>>, %arg3: memref<1x128xf32, #tpu.memory_space<vmem>>, %arg4: memref<32x2x32xf32, #tpu.memory_space<vmem>>, %arg5: memref<2x32x32xf32, #tpu.memory_space<vmem>>) attributes {dimension_semantics = [#tpu.dimension_semantics<arbitrary>], iteration_bounds = array<i64: 1>, scalar_prefetch = 0 : i64, scratch_operands = 0 : i64, tpu.core_type = #tpu.core_type<tc>, window_params = [{pipeline_mode = #tpu.pipeline_mode<synchronous>, transform_indices = @transform_0, window_bounds = array<i64: 64, 32>}, {pipeline_mode = #tpu.pipeline_mode<synchronous>, transform_indices = @transform_1, window_bounds = array<i64: 32, 128>}, {pipeline_mode = #tpu.pipeline_mode<synchronous>, transform_indices = @transform_2, window_bounds = array<i64: 1, 128>}, {pipeline_mode = #tpu.pipeline_mode<synchronous>, transform_indices = @transform_3, window_bounds = array<i64: 32, 2, 32>}, {pipeline_mode = #tpu.pipeline_mode<synchronous>, transform_indices = @transform_4, window_bounds = array<i64: 2, 32, 32>}]} {
    %c0 = arith.constant 0 : index
    %c0_0 = arith.constant 0 : index
    %0 = vector.load %arg1[%c0, %c0_0] : memref<64x32xf32, #tpu.memory_space<vmem>>, vector<64x32xf32>
    %c0_1 = arith.constant 0 : index
    %c0_2 = arith.constant 0 : index
    %1 = vector.load %arg2[%c0_1, %c0_2] : memref<32x128xf32, #tpu.memory_space<vmem>>, vector<32x128xf32>
    %c0_3 = arith.constant 0 : index
    %c0_4 = arith.constant 0 : index
    %2 = vector.load %arg3[%c0_3, %c0_4] : memref<1x128xf32, #tpu.memory_space<vmem>>, vector<1x128xf32>
    %3 = vector.extract_strided_slice %1 {offsets = [0, 96], sizes = [32, 32], strides = [1, 1]} : vector<32x128xf32> to vector<32x32xf32>
    %4 = vector.extract_strided_slice %1 {offsets = [0, 0], sizes = [32, 96], strides = [1, 1]} : vector<32x128xf32> to vector<32x96xf32>
    %cst = arith.constant dense<0.000000e+00> : vector<64x96xf32>
    %5 = tpu.matmul %0, %4, %cst {dimension_numbers = #tpu.dot_dimension_numbers<[1], [0], [0], [1], [0, 0, 1, 1], [], []>} : vector<64x32xf32>, vector<32x96xf32>, vector<64x96xf32> -> vector<64x96xf32>
    %6 = vector.extract_strided_slice %2 {offsets = [0, 0], sizes = [1, 96], strides = [1, 1]} : vector<1x128xf32> to vector<1x96xf32>
    %7 = vector.broadcast %6 : vector<1x96xf32> to vector<64x96xf32>
    %8 = arith.addf %5, %7 : vector<64x96xf32>
    %9 = vector.extract_strided_slice %8 {offsets = [0, 0], sizes = [64, 32], strides = [1, 1]} : vector<64x96xf32> to vector<64x32xf32>
    %10 = vector.shape_cast %9 : vector<64x32xf32> to vector<2x32x32xf32>
    %11 = vector.extract_strided_slice %8 {offsets = [0, 32], sizes = [64, 32], strides = [1, 1]} : vector<64x96xf32> to vector<64x32xf32>
    %12 = vector.shape_cast %11 : vector<64x32xf32> to vector<2x32x32xf32>
    %13 = vector.extract_strided_slice %8 {offsets = [0, 64], sizes = [64, 32], strides = [1, 1]} : vector<64x96xf32> to vector<64x32xf32>
    %14 = vector.shape_cast %13 : vector<64x32xf32> to vector<2x32x32xf32>
    %cst_5 = arith.constant 0.000000e+00 : f32
    %15 = vector.broadcast %cst_5 : f32 to vector<64x32xf32>
    %16 = vector.extract_strided_slice %10 {offsets = [0, 0, 0], sizes = [2, 32, 8], strides = [1, 1, 1]} : vector<2x32x32xf32> to vector<2x32x8xf32>
    %17 = vector.extract_strided_slice %12 {offsets = [0, 0, 0], sizes = [2, 32, 8], strides = [1, 1, 1]} : vector<2x32x32xf32> to vector<2x32x8xf32>
    %18 = vector.extract_strided_slice %14 {offsets = [0, 0, 0], sizes = [2, 32, 8], strides = [1, 1, 1]} : vector<2x32x32xf32> to vector<2x32x8xf32>
    "tpu.trace_start"() <{level = 10 : i32, message = "nld,nmd->nlm"}> : () -> ()
    %cst_6 = arith.constant dense<0.000000e+00> : vector<2x32x32xf32>
    %19 = tpu.matmul %16, %17, %cst_6 {dimension_numbers = #tpu.dot_dimension_numbers<[2], [2], [1], [1], [0, 0, 0, 1, 1, 1], [0], [0]>} : vector<2x32x8xf32>, vector<2x32x8xf32>, vector<2x32x32xf32> -> vector<2x32x32xf32>
    "tpu.trace_stop"() : () -> ()
    %cst_7 = arith.constant dense<0xFF800000> : vector<2x32xf32>
    %20 = vector.multi_reduction <maximumf>, %19, %cst_7 [2] : vector<2x32x32xf32> to vector<2x32xf32>
    %21 = vector.shape_cast %20 : vector<2x32xf32> to vector<2x32x1xf32>
    %22 = vector.broadcast %21 : vector<2x32x1xf32> to vector<2x32x32xf32>
    %23 = arith.subf %19, %22 : vector<2x32x32xf32>
    %24 = math.exp %23 : vector<2x32x32xf32>
    %cst_8 = arith.constant dense<0.000000e+00> : vector<2x32xf32>
    %25 = vector.multi_reduction <add>, %24, %cst_8 [2] : vector<2x32x32xf32> to vector<2x32xf32>
    %26 = vector.shape_cast %25 : vector<2x32xf32> to vector<2x32x1xf32>
    %27 = vector.broadcast %26 : vector<2x32x1xf32> to vector<2x32x32xf32>
    %28 = arith.divf %24, %27 : vector<2x32x32xf32>
    %cst_9 = arith.constant 2.500000e-01 : f32
    %29 = vector.broadcast %cst_9 : f32 to vector<2x32x32xf32>
    %30 = arith.mulf %28, %29 : vector<2x32x32xf32>
    %c0_10 = arith.constant 0 : index
    %c0_11 = arith.constant 0 : index
    %c0_12 = arith.constant 0 : index
    %31 = vector.load %arg5[%c0_10, %c0_11, %c0_12] : memref<2x32x32xf32, #tpu.memory_space<vmem>>, vector<2x32x32xf32>
    tpu.vector_store %arg5[%c0_10, %c0_11, %c0_12], %30 {strides = array<i32>} : memref<2x32x32xf32, #tpu.memory_space<vmem>>, vector<2x32x32xf32>,
    "tpu.trace_start"() <{level = 10 : i32, message = "nlm,nmd->nld"}> : () -> ()
    %cst_13 = arith.constant dense<0.000000e+00> : vector<2x32x8xf32>
    %32 = tpu.matmul %28, %18, %cst_13 {dimension_numbers = #tpu.dot_dimension_numbers<[2], [1], [1], [2], [0, 0, 0, 1, 1, 2], [0], [0]>} : vector<2x32x32xf32>, vector<2x32x8xf32>, vector<2x32x8xf32> -> vector<2x32x8xf32>
    "tpu.trace_stop"() : () -> ()
    %33 = vector.shape_cast %32 : vector<2x32x8xf32> to vector<64x8xf32>
    %34 = vector.extract_strided_slice %3 {offsets = [0, 0], sizes = [8, 32], strides = [1, 1]} : vector<32x32xf32> to vector<8x32xf32>
    %cst_14 = arith.constant dense<0.000000e+00> : vector<64x32xf32>
    %35 = tpu.matmul %33, %34, %cst_14 {dimension_numbers = #tpu.dot_dimension_numbers<[1], [0], [0], [1], [0, 0, 1, 1], [], []>} : vector<64x8xf32>, vector<8x32xf32>, vector<64x32xf32> -> vector<64x32xf32>
    %36 = arith.addf %15, %35 : vector<64x32xf32>
    %37 = vector.extract_strided_slice %10 {offsets = [0, 0, 8], sizes = [2, 32, 8], strides = [1, 1, 1]} : vector<2x32x32xf32> to vector<2x32x8xf32>
    %38 = vector.extract_strided_slice %12 {offsets = [0, 0, 8], sizes = [2, 32, 8], strides = [1, 1, 1]} : vector<2x32x32xf32> to vector<2x32x8xf32>
    %39 = vector.extract_strided_slice %14 {offsets = [0, 0, 8], sizes = [2, 32, 8], strides = [1, 1, 1]} : vector<2x32x32xf32> to vector<2x32x8xf32>
    "tpu.trace_start"() <{level = 10 : i32, message = "nld,nmd->nlm"}> : () -> ()
    %cst_15 = arith.constant dense<0.000000e+00> : vector<2x32x32xf32>
    %40 = tpu.matmul %37, %38, %cst_15 {dimension_numbers = #tpu.dot_dimension_numbers<[2], [2], [1], [1], [0, 0, 0, 1, 1, 1], [0], [0]>} : vector<2x32x8xf32>, vector<2x32x8xf32>, vector<2x32x32xf32> -> vector<2x32x32xf32>
    "tpu.trace_stop"() : () -> ()
    %cst_16 = arith.constant dense<0xFF800000> : vector<2x32xf32>
    %41 = vector.multi_reduction <maximumf>, %40, %cst_16 [2] : vector<2x32x32xf32> to vector<2x32xf32>
    %42 = vector.shape_cast %41 : vector<2x32xf32> to vector<2x32x1xf32>
    %43 = vector.broadcast %42 : vector<2x32x1xf32> to vector<2x32x32xf32>
    %44 = arith.subf %40, %43 : vector<2x32x32xf32>
    %45 = math.exp %44 : vector<2x32x32xf32>
    %cst_17 = arith.constant dense<0.000000e+00> : vector<2x32xf32>
    %46 = vector.multi_reduction <add>, %45, %cst_17 [2] : vector<2x32x32xf32> to vector<2x32xf32>
    %47 = vector.shape_cast %46 : vector<2x32xf32> to vector<2x32x1xf32>
    %48 = vector.broadcast %47 : vector<2x32x1xf32> to vector<2x32x32xf32>
    %49 = arith.divf %45, %48 : vector<2x32x32xf32>
    %c0_18 = arith.constant 0 : index
    %c0_19 = arith.constant 0 : index
    %c0_20 = arith.constant 0 : index
    %50 = vector.load %arg5[%c0_18, %c0_19, %c0_20] : memref<2x32x32xf32, #tpu.memory_space<vmem>>, vector<2x32x32xf32>
    %cst_21 = arith.constant 2.500000e-01 : f32
    %51 = vector.broadcast %cst_21 : f32 to vector<2x32x32xf32>
    %52 = arith.mulf %49, %51 : vector<2x32x32xf32>
    %53 = arith.addf %50, %52 : vector<2x32x32xf32>
    %c0_22 = arith.constant 0 : index
    %c0_23 = arith.constant 0 : index
    %c0_24 = arith.constant 0 : index
    %54 = vector.load %arg5[%c0_22, %c0_23, %c0_24] : memref<2x32x32xf32, #tpu.memory_space<vmem>>, vector<2x32x32xf32>
    tpu.vector_store %arg5[%c0_22, %c0_23, %c0_24], %53 {strides = array<i32>} : memref<2x32x32xf32, #tpu.memory_space<vmem>>, vector<2x32x32xf32>,
    "tpu.trace_start"() <{level = 10 : i32, message = "nlm,nmd->nld"}> : () -> ()
    %cst_25 = arith.constant dense<0.000000e+00> : vector<2x32x8xf32>
    %55 = tpu.matmul %49, %39, %cst_25 {dimension_numbers = #tpu.dot_dimension_numbers<[2], [1], [1], [2], [0, 0, 0, 1, 1, 2], [0], [0]>} : vector<2x32x32xf32>, vector<2x32x8xf32>, vector<2x32x8xf32> -> vector<2x32x8xf32>
    "tpu.trace_stop"() : () -> ()
    %56 = vector.shape_cast %55 : vector<2x32x8xf32> to vector<64x8xf32>
    %57 = vector.extract_strided_slice %3 {offsets = [8, 0], sizes = [8, 32], strides = [1, 1]} : vector<32x32xf32> to vector<8x32xf32>
    %cst_26 = arith.constant dense<0.000000e+00> : vector<64x32xf32>
    %58 = tpu.matmul %56, %57, %cst_26 {dimension_numbers = #tpu.dot_dimension_numbers<[1], [0], [0], [1], [0, 0, 1, 1], [], []>} : vector<64x8xf32>, vector<8x32xf32>, vector<64x32xf32> -> vector<64x32xf32>
    %59 = arith.addf %36, %58 : vector<64x32xf32>
    %60 = vector.extract_strided_slice %10 {offsets = [0, 0, 16], sizes = [2, 32, 8], strides = [1, 1, 1]} : vector<2x32x32xf32> to vector<2x32x8xf32>
    %61 = vector.extract_strided_slice %12 {offsets = [0, 0, 16], sizes = [2, 32, 8], strides = [1, 1, 1]} : vector<2x32x32xf32> to vector<2x32x8xf32>
    %62 = vector.extract_strided_slice %14 {offsets = [0, 0, 16], sizes = [2, 32, 8], strides = [1, 1, 1]} : vector<2x32x32xf32> to vector<2x32x8xf32>
    "tpu.trace_start"() <{level = 10 : i32, message = "nld,nmd->nlm"}> : () -> ()
    %cst_27 = arith.constant dense<0.000000e+00> : vector<2x32x32xf32>
    %63 = tpu.matmul %60, %61, %cst_27 {dimension_numbers = #tpu.dot_dimension_numbers<[2], [2], [1], [1], [0, 0, 0, 1, 1, 1], [0], [0]>} : vector<2x32x8xf32>, vector<2x32x8xf32>, vector<2x32x32xf32> -> vector<2x32x32xf32>
    "tpu.trace_stop"() : () -> ()
    %cst_28 = arith.constant dense<0xFF800000> : vector<2x32xf32>
    %64 = vector.multi_reduction <maximumf>, %63, %cst_28 [2] : vector<2x32x32xf32> to vector<2x32xf32>
    %65 = vector.shape_cast %64 : vector<2x32xf32> to vector<2x32x1xf32>
    %66 = vector.broadcast %65 : vector<2x32x1xf32> to vector<2x32x32xf32>
    %67 = arith.subf %63, %66 : vector<2x32x32xf32>
    %68 = math.exp %67 : vector<2x32x32xf32>
    %cst_29 = arith.constant dense<0.000000e+00> : vector<2x32xf32>
    %69 = vector.multi_reduction <add>, %68, %cst_29 [2] : vector<2x32x32xf32> to vector<2x32xf32>
    %70 = vector.shape_cast %69 : vector<2x32xf32> to vector<2x32x1xf32>
    %71 = vector.broadcast %70 : vector<2x32x1xf32> to vector<2x32x32xf32>
    %72 = arith.divf %68, %71 : vector<2x32x32xf32>
    %c0_30 = arith.constant 0 : index
    %c0_31 = arith.constant 0 : index
    %c0_32 = arith.constant 0 : index
    %73 = vector.load %arg5[%c0_30, %c0_31, %c0_32] : memref<2x32x32xf32, #tpu.memory_space<vmem>>, vector<2x32x32xf32>
    %cst_33 = arith.constant 2.500000e-01 : f32
    %74 = vector.broadcast %cst_33 : f32 to vector<2x32x32xf32>
    %75 = arith.mulf %72, %74 : vector<2x32x32xf32>
    %76 = arith.addf %73, %75 : vector<2x32x32xf32>
    %c0_34 = arith.constant 0 : index
    %c0_35 = arith.constant 0 : index
    %c0_36 = arith.constant 0 : index
    %77 = vector.load %arg5[%c0_34, %c0_35, %c0_36] : memref<2x32x32xf32, #tpu.memory_space<vmem>>, vector<2x32x32xf32>
    tpu.vector_store %arg5[%c0_34, %c0_35, %c0_36], %76 {strides = array<i32>} : memref<2x32x32xf32, #tpu.memory_space<vmem>>, vector<2x32x32xf32>,
    "tpu.trace_start"() <{level = 10 : i32, message = "nlm,nmd->nld"}> : () -> ()
    %cst_37 = arith.constant dense<0.000000e+00> : vector<2x32x8xf32>
    %78 = tpu.matmul %72, %62, %cst_37 {dimension_numbers = #tpu.dot_dimension_numbers<[2], [1], [1], [2], [0, 0, 0, 1, 1, 2], [0], [0]>} : vector<2x32x32xf32>, vector<2x32x8xf32>, vector<2x32x8xf32> -> vector<2x32x8xf32>
    "tpu.trace_stop"() : () -> ()
    %79 = vector.shape_cast %78 : vector<2x32x8xf32> to vector<64x8xf32>
    %80 = vector.extract_strided_slice %3 {offsets = [16, 0], sizes = [8, 32], strides = [1, 1]} : vector<32x32xf32> to vector<8x32xf32>
    %cst_38 = arith.constant dense<0.000000e+00> : vector<64x32xf32>
    %81 = tpu.matmul %79, %80, %cst_38 {dimension_numbers = #tpu.dot_dimension_numbers<[1], [0], [0], [1], [0, 0, 1, 1], [], []>} : vector<64x8xf32>, vector<8x32xf32>, vector<64x32xf32> -> vector<64x32xf32>
    %82 = arith.addf %59, %81 : vector<64x32xf32>
    %83 = vector.extract_strided_slice %10 {offsets = [0, 0, 24], sizes = [2, 32, 8], strides = [1, 1, 1]} : vector<2x32x32xf32> to vector<2x32x8xf32>
    %84 = vector.extract_strided_slice %12 {offsets = [0, 0, 24], sizes = [2, 32, 8], strides = [1, 1, 1]} : vector<2x32x32xf32> to vector<2x32x8xf32>
    %85 = vector.extract_strided_slice %14 {offsets = [0, 0, 24], sizes = [2, 32, 8], strides = [1, 1, 1]} : vector<2x32x32xf32> to vector<2x32x8xf32>
    "tpu.trace_start"() <{level = 10 : i32, message = "nld,nmd->nlm"}> : () -> ()
    %cst_39 = arith.constant dense<0.000000e+00> : vector<2x32x32xf32>
    %86 = tpu.matmul %83, %84, %cst_39 {dimension_numbers = #tpu.dot_dimension_numbers<[2], [2], [1], [1], [0, 0, 0, 1, 1, 1], [0], [0]>} : vector<2x32x8xf32>, vector<2x32x8xf32>, vector<2x32x32xf32> -> vector<2x32x32xf32>
    "tpu.trace_stop"() : () -> ()
    %cst_40 = arith.constant dense<0xFF800000> : vector<2x32xf32>
    %87 = vector.multi_reduction <maximumf>, %86, %cst_40 [2] : vector<2x32x32xf32> to vector<2x32xf32>
    %88 = vector.shape_cast %87 : vector<2x32xf32> to vector<2x32x1xf32>
    %89 = vector.broadcast %88 : vector<2x32x1xf32> to vector<2x32x32xf32>
    %90 = arith.subf %86, %89 : vector<2x32x32xf32>
    %91 = math.exp %90 : vector<2x32x32xf32>
    %cst_41 = arith.constant dense<0.000000e+00> : vector<2x32xf32>
    %92 = vector.multi_reduction <add>, %91, %cst_41 [2] : vector<2x32x32xf32> to vector<2x32xf32>
    %93 = vector.shape_cast %92 : vector<2x32xf32> to vector<2x32x1xf32>
    %94 = vector.broadcast %93 : vector<2x32x1xf32> to vector<2x32x32xf32>
    %95 = arith.divf %91, %94 : vector<2x32x32xf32>
    %c0_42 = arith.constant 0 : index
    %c0_43 = arith.constant 0 : index
    %c0_44 = arith.constant 0 : index
    %96 = vector.load %arg5[%c0_42, %c0_43, %c0_44] : memref<2x32x32xf32, #tpu.memory_space<vmem>>, vector<2x32x32xf32>
    %cst_45 = arith.constant 2.500000e-01 : f32
    %97 = vector.broadcast %cst_45 : f32 to vector<2x32x32xf32>
    %98 = arith.mulf %95, %97 : vector<2x32x32xf32>
    %99 = arith.addf %96, %98 : vector<2x32x32xf32>
    %c0_46 = arith.constant 0 : index
    %c0_47 = arith.constant 0 : index
    %c0_48 = arith.constant 0 : index
    %100 = vector.load %arg5[%c0_46, %c0_47, %c0_48] : memref<2x32x32xf32, #tpu.memory_space<vmem>>, vector<2x32x32xf32>
    tpu.vector_store %arg5[%c0_46, %c0_47, %c0_48], %99 {strides = array<i32>} : memref<2x32x32xf32, #tpu.memory_space<vmem>>, vector<2x32x32xf32>,
    "tpu.trace_start"() <{level = 10 : i32, message = "nlm,nmd->nld"}> : () -> ()
    %cst_49 = arith.constant dense<0.000000e+00> : vector<2x32x8xf32>
    %101 = tpu.matmul %95, %85, %cst_49 {dimension_numbers = #tpu.dot_dimension_numbers<[2], [1], [1], [2], [0, 0, 0, 1, 1, 2], [0], [0]>} : vector<2x32x32xf32>, vector<2x32x8xf32>, vector<2x32x8xf32> -> vector<2x32x8xf32>
    "tpu.trace_stop"() : () -> ()
    %102 = vector.shape_cast %101 : vector<2x32x8xf32> to vector<64x8xf32>
    %103 = vector.extract_strided_slice %3 {offsets = [24, 0], sizes = [8, 32], strides = [1, 1]} : vector<32x32xf32> to vector<8x32xf32>
    %cst_50 = arith.constant dense<0.000000e+00> : vector<64x32xf32>
    %104 = tpu.matmul %102, %103, %cst_50 {dimension_numbers = #tpu.dot_dimension_numbers<[1], [0], [0], [1], [0, 0, 1, 1], [], []>} : vector<64x8xf32>, vector<8x32xf32>, vector<64x32xf32> -> vector<64x32xf32>
    %105 = arith.addf %82, %104 : vector<64x32xf32>
    %106 = vector.extract_strided_slice %2 {offsets = [0, 96], sizes = [1, 32], strides = [1, 1]} : vector<1x128xf32> to vector<1x32xf32>
    %107 = vector.broadcast %106 : vector<1x32xf32> to vector<64x32xf32>
    %108 = arith.addf %105, %107 : vector<64x32xf32>
    %109 = vector.extract_strided_slice %108 {offsets = [0, 0], sizes = [32, 32], strides = [1, 1]} : vector<64x32xf32> to vector<32x32xf32>
    %110 = vector.shape_cast %109 : vector<32x32xf32> to vector<32x1x32xf32>
    %c0_51 = arith.constant 0 : index
    %c0_52 = arith.constant 0 : index
    %c0_53 = arith.constant 0 : index
    %111 = vector.load %arg4[%c0_51, %c0_52, %c0_53] : memref<32x2x32xf32, #tpu.memory_space<vmem>>, vector<32x1x32xf32>
    tpu.vector_store %arg4[%c0_51, %c0_52, %c0_53], %110 {strides = array<i32>} : memref<32x2x32xf32, #tpu.memory_space<vmem>>, vector<32x1x32xf32>,
    %112 = vector.extract_strided_slice %108 {offsets = [32, 0], sizes = [32, 32], strides = [1, 1]} : vector<64x32xf32> to vector<32x32xf32>
    %113 = vector.shape_cast %112 : vector<32x32xf32> to vector<32x1x32xf32>
    %c0_54 = arith.constant 0 : index
    %c1 = arith.constant 1 : index
    %c0_55 = arith.constant 0 : index
    %114 = vector.load %arg4[%c0_54, %c1, %c0_55] : memref<32x2x32xf32, #tpu.memory_space<vmem>>, vector<32x1x32xf32>
    tpu.vector_store %arg4[%c0_54, %c1, %c0_55], %113 {strides = array<i32>} : memref<32x2x32xf32, #tpu.memory_space<vmem>>, vector<32x1x32xf32>,
    return
  }
  func.func @transform_0(%arg0: i32) -> (i32, i32) {
    %c0_i32 = arith.constant 0 : i32
    %c0_i32_0 = arith.constant 0 : i32
    %c0_i32_1 = arith.constant 0 : i32
    return %c0_i32, %c0_i32_0 : i32, i32
  }
  func.func @transform_1(%arg0: i32) -> (i32, i32) {
    %c0_i32 = arith.constant 0 : i32
    %c0_i32_0 = arith.constant 0 : i32
    %c0_i32_1 = arith.constant 0 : i32
    return %c0_i32, %c0_i32_0 : i32, i32
  }
  func.func @transform_2(%arg0: i32) -> (i32, i32) {
    %c0_i32 = arith.constant 0 : i32
    %c0_i32_0 = arith.constant 0 : i32
    %c0_i32_1 = arith.constant 0 : i32
    return %c0_i32, %c0_i32_0 : i32, i32
  }
  func.func @transform_3(%arg0: i32) -> (i32, i32, i32) {
    %c0_i32 = arith.constant 0 : i32
    %c0_i32_0 = arith.constant 0 : i32
    %c0_i32_1 = arith.constant 0 : i32
    %c0_i32_2 = arith.constant 0 : i32
    return %c0_i32, %c0_i32_0, %c0_i32_1 : i32, i32, i32
  }
  func.func @transform_4(%arg0: i32) -> (i32, i32, i32) {
    %c0_i32 = arith.constant 0 : i32
    %c0_i32_0 = arith.constant 0 : i32
    %c0_i32_1 = arith.constant 0 : i32
    %c0_i32_2 = arith.constant 0 : i32
    return %c0_i32, %c0_i32_0, %c0_i32_1 : i32, i32, i32
  }
}

</mosaic_0001>

<bundles_post_ra>
// kernel: self_attention_forward.1
= control target key start
LH: loop header
LB: loop body
LE: loop exit
PB: predicated region body
PF: predicated region fallthrough
CT: control target
= control target key end

     0   :  { %10 = vsyncpa [#allocation3], 0  ;;  %vm37_vm0 = vcmask 261120   ;;  %s5262_s0 = inlined_call_operand.vmem [shape: f32[64,32], index: 0, kind: input, shape index: {}]   ;;  %s5263_s1 = inlined_call_operand.vmem [shape: f32[32,128], index: 1, kind: input, shape index: {}]   ;;  %s5264_s2 = inlined_call_operand.vmem [shape: f32[1,128], index: 2, kind: input, shape index: {}]   ;;  %s5265_s3 = inlined_call_operand.hbm [shape: f32[32,2,32], index: 3, kind: output, shape index: {0}]   ;;  %s5266_s4 = inlined_call_operand.hbm [shape: f32[2,32,32], index: 4, kind: output, shape index: {1}]  }
   0x1   :  { %v29_v0 = vld [vmem:[%s5263_s1 + $0x18] sm:$0xff]  ;;  %v28_v1 = vld [vmem:[%s5263_s1 + $0x10] sm:$0xff]  ;;  %v18_v2 = vld [vmem:[%s5262_s0] sm:$0xff] }
   0x2   :  { %3865 = vmatprep.subr.mxu1 %v29_v0  ;;  %v4413_v3 = vld [vmem:[%s5263_s1 + $0x8] sm:$0xff]  ;;  %3873 = vmatprep.mubr.msk.f32.mxu1 %vm37_vm0, %v18_v2  ;;  %v4419_v4 = vld [vmem:[%s5263_s1] sm:$0xff] }
   0x3   :  { %3866 = vmatpush3.msra.mxu1 %v29_v0 }
   0x4   :  { %3867 = vmatprep.subr.mxu1 %v28_v1 }
   0x5   :  { %3868 = vmatpush3.msra.mxu1 %v28_v1 }
   0x6   :  { %11 = vsyncpa [#allocation5], 0  ;;  %3869 = vmatprep.subr.mxu1 %v4413_v3  ;;  %v19_v5 = vld [vmem:[%s5262_s0 + $0x8] sm:$0xff]  ;;  %v20_v6 = vld [vmem:[%s5262_s0 + $0x10] sm:$0xff]  ;;  %vm179_vm1 = vcmask 64512   ;;  %s4358_s15 = smov 96  }
   0x7   :  { %3870 = vmatpush3.msra.mxu1 %v4413_v3  ;;  %v21_v7 = vld [vmem:[%s5262_s0 + $0x18] sm:$0xff]  ;;  %v22_v8 = vld [vmem:[%s5262_s0 + $0x20] sm:$0xff]  ;;  %v23_v9 = vld [vmem:[%s5262_s0 + $0x28] sm:$0xff]  ;;  %s4360_s16 = smov 88   ;;  %s4361_s17 = smov 120   ;;  %vm3223_vm2 = vcmask 253952  }
   0x8   :  { %3871 = vmatprep.subr.mxu1 %v4419_v4  ;;  %v24_v10 = vld [vmem:[%s5262_s0 + $0x30] sm:$0xff]  ;;  %v25_v11 = vld [vmem:[%s5262_s0 + $0x38] sm:$0xff]  ;;  %v3552_v12 = vld [vmem:[%s5264_s2] ss:$0 sm:$0xff]  ;;  %s4359_s0 = smov 64   ;;  %s4362_s18 = smov 56  }
   0x9   :  { %3872 = vmatpush3.msra.mxu1 %v4419_v4  ;;  %s4363_s19 = smov 80   ;;  %s4364_s20 = smov 32  }
   0xa   :  { %3874 = vmatmul.mubr.msk.f32.vlgmr.msra.gmra.mxu1 %vm37_vm0, %v19_v5  ;;  %s4365_s21 = smov 112   ;;  %s4366_s22 = smov 48  }
   0xb   :  { %3876 = vmatprep.mubr.msk.f32.mxu1 %vm37_vm0, %v20_v6  ;;  %s4367_s23 = smov 72   ;;  %s4368_s26 = smov 104  }
   0xc   :  { %s4369_s27 = smov 40  }
   0xe   :  { %3877 = vmatmul.mubr.msk.f32.gmra.mxu1 %vm37_vm0, %v21_v7 }
   0xf   :  { %3879 = vmatprep.mubr.msk.f32.mxu1 %vm37_vm0, %v22_v8 }
  0x12   :  { %3880 = vmatmul.mubr.msk.f32.gmra.mxu1 %vm37_vm0, %v23_v9 }
  0x13   :  { %3882 = vmatprep.mubr.msk.f32.mxu1 %vm37_vm0, %v24_v10 }
  0x16   :  { %3883 = vmatmul.mubr.msk.f32.gmra.mxu1 %vm37_vm0, %v25_v11 }
  0xca   :  { %v3875_v13 = vpop.f32.mrf.mxu1 }
  0xcb   :  { %v4456_v14 = vadd.f32 %v3875_v13, %v3552_v12 }
  0xcc   :  { %v128_v15 = vpop.f32.mrf.mxu1 }
  0xcd   :  { %v4458_v16 = vadd.f32 %v3552_v12, %v128_v15  ;;  %173 = vrot.lane.b32.xlu1 %v4456_v14, %s4358_s15 }
  0xce   :  { %v3878_v17 = vpop.f32.mrf.mxu1 }
  0xcf   :  { %v4461_v18 = vadd.f32 %v3878_v17, %v3552_v12  ;;  %3893 = vmatprep.mubr.msk.f32.mxu1 %vm179_vm1, %v4458_v16 }
  0xd0   :  { %v138_v19 = vpop.f32.mrf.mxu1 }
  0xd1   :  { %177 = vrot.lane.b32.xlu0 %v4461_v18, %s4358_s15  ;;  %v4466_v21 = vadd.f32 %v3552_v12, %v138_v19 }
  0xd2   :  { %v3881_v20 = vpop.f32.mrf.mxu1 }
  0xd3   :  { %v4477_v27 = vadd.f32 %v3881_v20, %v3552_v12 }
  0xd4   :  { %v148_v22 = vpop.f32.mrf.mxu1 }
  0xd5   :  { %v4468_v23 = vadd.f32 %v3552_v12, %v148_v22  ;;  %175 = vrot.lane.b32.xlu0 %v4466_v21, %s4358_s15 }
  0xd6   :  { %v3884_v24 = vpop.f32.mrf.mxu1 }
  0xd7   :  { %v4471_v25 = vadd.f32 %v3884_v24, %v3552_v12  ;;  %3907 = vmatprep.mubr.msk.f32.mxu0 %vm179_vm1, %v4468_v23 }
  0xd8   :  { %v158_v26 = vpop.f32.mrf.mxu1 }
  0xd9   :  { %291 = vrot.lane.b32.xlu1 %v4471_v25, %s4358_s15  ;;  %171 = vrot.lane.b32.xlu0 %v4458_v16, %s4358_s15  ;;  %v4479_v28 = vadd.f32 %v3552_v12, %v158_v26 }
  0xdd   :  { %289 = vrot.lane.b32.xlu1 %v4479_v28, %s4358_s15  ;;  %287 = vrot.lane.b32.xlu0 %v4477_v27, %s4358_s15 }
  0xe1   :  { %285 = vrot.lane.b32.xlu1 %v4468_v23, %s4358_s15  ;;  %502 = vrot.lane.b32.xlu0 %v4466_v21, %s4359_s0 }
  0xe5   :  { %504 = vrot.lane.b32.xlu1 %v4461_v18, %s4359_s0  ;;  %613 = vrot.lane.b32.xlu0 %v4471_v25, %s4359_s0 }
  0xe9   :  { %500 = vrot.lane.b32.xlu1 %v4456_v14, %s4359_s0  ;;  %728 = vrot.lane.b32.xlu0 %v4466_v21, %s4360_s16 }
  0xed   :  { %498 = vrot.lane.b32.xlu1 %v4458_v16, %s4359_s0  ;;  %726 = vrot.lane.b32.xlu0 %v4456_v14, %s4360_s16 }
  0xf1   :  { %730 = vrot.lane.b32.xlu1 %v4461_v18, %s4360_s16  ;;  %724 = vrot.lane.b32.xlu0 %v4458_v16, %s4360_s16 }
  0xf5   :  { %609 = vrot.lane.b32.xlu1 %v4477_v27, %s4359_s0  ;;  %716 = vrot.lane.b32.xlu0 %v4458_v16, %s4361_s17 }
  0xf9   :  { %607 = vrot.lane.b32.xlu1 %v4468_v23, %s4359_s0  ;;  %611 = vrot.lane.b32.xlu0 %v4479_v28, %s4359_s0 }
  0xfd   :  { %847 = vrot.lane.b32.xlu1 %v4471_v25, %s4360_s16 }
 0x101   :  { %718 = vrot.lane.b32.xlu1 %v4456_v14, %s4361_s17 }
 0x105   :  { %845 = vrot.lane.b32.xlu1 %v4479_v28, %s4360_s16 }
 0x13f   :  { %v174_v30 = vpop.permute.xlu1 %173 }
 0x143   :  { %v178_v29 = vpop.permute.xlu0 %177 }
 0x144   :  { %3885 = vmatprep.subr.msk.mxu1 %vm179_vm1, %v178_v29 }
 0x145   :  { %3886 = vmatpush3.xpose.msk.msra.mxu1 %vm179_vm1, %v178_v29 }
 0x147   :  { %v176_v31 = vpop.permute.xlu0 %175 }
 0x148   :  { %3887 = vmatprep.subr.msk.mxu1 %vm179_vm1, %v176_v31 }
 0x149   :  { %3888 = vmatpush3.xpose.msk.msra.mxu1 %vm179_vm1, %v176_v31 }
 0x14a   :  { %3889 = vmatprep.subr.msk.mxu1 %vm179_vm1, %v174_v30 }
 0x14b   :  { %v292_v32 = vpop.permute.xlu1 %291  ;;  %v172_v33 = vpop.permute.xlu0 %171 }
 0x14c   :  { %3899 = vmatprep.subr.msk.mxu0 %vm179_vm1, %v292_v32 }
 0x14d   :  { %3890 = vmatpush3.xpose.msk.msra.mxu1 %vm179_vm1, %v174_v30  ;;  %3900 = vmatpush3.xpose.msk.msra.mxu0 %vm179_vm1, %v292_v32 }
 0x14e   :  { %3891 = vmatprep.subr.msk.mxu1 %vm179_vm1, %v172_v33 }
 0x14f   :  { %v290_v34 = vpop.permute.xlu1 %289  ;;  %v288_v35 = vpop.permute.xlu0 %287 }
 0x150   :  { %3901 = vmatprep.subr.msk.mxu0 %vm179_vm1, %v290_v34 }
 0x151   :  { %3892 = vmatpush3.xpose.msk.msra.mxu1 %vm179_vm1, %v172_v33  ;;  %3902 = vmatpush3.xpose.msk.msra.mxu0 %vm179_vm1, %v290_v34 }
 0x152   :  { %3903 = vmatprep.subr.msk.mxu0 %vm179_vm1, %v288_v35 }
 0x153   :  { %v286_v36 = vpop.permute.xlu1 %285  ;;  %v503_v37 = vpop.permute.xlu0 %502 }
 0x154   :  { %3894 = vmatmul.mubr.msk.f32.vlgmr.msra.gmra.mxu1 %vm179_vm1, %v4456_v14 }
 0x155   :  { %3896 = vmatprep.mubr.msk.f32.mxu1 %vm179_vm1, %v4466_v21  ;;  %3904 = vmatpush3.xpose.msk.msra.mxu0 %vm179_vm1, %v288_v35 }
 0x156   :  { %3905 = vmatprep.subr.msk.mxu0 %vm179_vm1, %v286_v36 }
 0x157   :  { %v505_v38 = vpop.permute.xlu1 %504  ;;  %v614_v39 = vpop.permute.xlu0 %613 }
 0x158   :  { %3897 = vmatmul.mubr.msk.f32.gmra.mxu1 %vm179_vm1, %v4461_v18  ;;  %3913 = vmatprep.subr.mxu1 %v505_v38 }
 0x159   :  { %3906 = vmatpush3.xpose.msk.msra.mxu0 %vm179_vm1, %v286_v36  ;;  %3914 = vmatpush3.msra.mxu1 %v505_v38 }
 0x15a   :  { %3915 = vmatprep.subr.mxu1 %v503_v37  ;;  %3927 = vmatprep.subr.mxu0 %v614_v39 }
 0x15b   :  { %v501_v40 = vpop.permute.xlu1 %500  ;;  %v4530_v41 = vpop.permute.xlu0 %728  ;;  %3916 = vmatpush3.msra.mxu1 %v503_v37 }
 0x15c   :  { %3908 = vmatmul.mubr.msk.f32.vlgmr.msra.gmra.mxu0 %vm179_vm1, %v4477_v27  ;;  %3917 = vmatprep.subr.mxu1 %v501_v40 }
 0x15d   :  { %3910 = vmatprep.mubr.msk.f32.mxu0 %vm179_vm1, %v4479_v28  ;;  %3918 = vmatpush3.msra.mxu1 %v501_v40 }
 0x15e   :  { %3928 = vmatpush3.msra.mxu0 %v614_v39 }
 0x15f   :  { %v499_v42 = vpop.permute.xlu1 %498  ;;  %v4536_v43 = vpop.permute.xlu0 %726 }
 0x160   :  { %3911 = vmatmul.mubr.msk.f32.gmra.mxu0 %vm179_vm1, %v4471_v25  ;;  %3919 = vmatprep.subr.mxu1 %v499_v42 }
 0x161   :  { %3920 = vmatpush3.msra.mxu1 %v499_v42 }
 0x163   :  { %v4540_v44 = vpop.permute.xlu1 %730  ;;  %v4542_v45 = vpop.permute.xlu0 %724 }
 0x164   :  { %3941 = vmatprep.subr.msk.mxu1 %vm179_vm1, %v4540_v44 }
 0x167   :  { %v610_v46 = vpop.permute.xlu1 %609  ;;  %v4546_v47 = vpop.permute.xlu0 %716 }
 0x16b   :  { %v608_v48 = vpop.permute.xlu1 %607  ;;  %v612_v49 = vpop.permute.xlu0 %611 }
 0x16c   :  { %3929 = vmatprep.subr.mxu0 %v612_v49 }
 0x16d   :  { %3930 = vmatpush3.msra.mxu0 %v612_v49 }
 0x16e   :  { %3931 = vmatprep.subr.mxu0 %v610_v46 }
 0x16f   :  { %3932 = vmatpush3.msra.mxu0 %v610_v46  ;;  %v4548_v50 = vpop.permute.xlu1 %847 }
 0x170   :  { %3933 = vmatprep.subr.mxu0 %v608_v48 }
 0x171   :  { %3934 = vmatpush3.msra.mxu0 %v608_v48 }
 0x172   :  { %3955 = vmatprep.subr.msk.mxu0 %vm179_vm1, %v4548_v50 }
 0x173   :  { %v4564_v5 = vpop.permute.xlu1 %718 }
 0x177   :  { %v4566_v6 = vpop.permute.xlu1 %845 }
 0x214   :  { %v3895_v51 = vpop.f32.mrf.mxu1 }
 0x215   :  { %v397_v52 = vsel %vm37_vm0, %v3895_v51, -inf }
 0x216   :  { %398 = vmax.xlane.f32.xlu1 %v397_v52  ;;  %v262_v53 = vpop.f32.mrf.mxu1 }
 0x217   :  { %v394_v54 = vsel %vm37_vm0, %v262_v53, -inf }
 0x218   :  { %395 = vmax.xlane.f32.xlu0 %v394_v54  ;;  %v3898_v55 = vpop.f32.mrf.mxu1 }
 0x219   :  { %v403_v57 = vsel %vm37_vm0, %v3898_v55, -inf }
 0x21a   :  { %v272_v56 = vpop.f32.mrf.mxu1 }
 0x21b   :  { %v400_v58 = vsel %vm37_vm0, %v272_v56, -inf }
 0x21c   :  { %v3909_v59 = vpop.f32.mrf.mxu0  ;;  %404 = vmax.xlane.f32.xlu0 %v403_v57  ;;  %401 = vmax.xlane.f32.xlu1 %v400_v58 }
 0x21d   :  { %v409_v61 = vsel %vm37_vm0, %v3909_v59, -inf }
 0x21e   :  { %v375_v60 = vpop.f32.mrf.mxu0 }
 0x21f   :  { %v406_v0 = vsel %vm37_vm0, %v375_v60, -inf }
 0x220   :  { %v3912_v62 = vpop.f32.mrf.mxu0  ;;  %410 = vmax.xlane.f32.xlu0 %v409_v61 }
 0x221   :  { %v415_v2 = vsel %vm37_vm0, %v3912_v62, -inf }
 0x222   :  { %v385_v63 = vpop.f32.mrf.mxu0 }
 0x223   :  { %v412_v1 = vsel %vm37_vm0, %v385_v63, -inf }
 0x224   :  { %407 = vmax.xlane.f32.xlu0 %v406_v0  ;;  %413 = vmax.xlane.f32.xlu1 %v412_v1 }
 0x228   :  { %416 = vmax.xlane.f32.xlu0 %v415_v2 }
 0x235   :  { %720 = vrot.lane.b32.xlu1 %v4466_v21, %s4361_s17 }
 0x23e   :  { %843 = vrot.lane.b32.xlu0 %v4477_v27, %s4360_s16 }
 0x29f   :  { %v399_v7 = vpop.xlane.xlu1 %398 }
 0x2a0   :  { %v419_v8 = vsub.f32 %v3895_v51, %v399_v7 }
 0x2a1   :  { %v396_v9 = vpop.xlane.xlu0 %395 }
 0x2a2   :  { %v428_v10 = vmul.f32 1.442695, %v419_v8  ;;  %v418_v11 = vsub.f32 %v262_v53, %v396_v9 }
 0x2a4   :  { %4183 = vpow2.f32 %v428_v10  ;;  %v426_v12 = vmul.f32 1.442695, %v418_v11 }
 0x2a5   :  { %v405_v13 = vpop.xlane.xlu0 %404  ;;  %v402_v15 = vpop.xlane.xlu1 %401 }
 0x2a6   :  { %4185 = vpow2.f32 %v426_v12  ;;  %v421_v17 = vsub.f32 %v3898_v55, %v405_v13  ;;  %v420_v19 = vsub.f32 %v272_v56, %v402_v15 }
 0x2a8   :  { %v432_v20 = vmul.f32 1.442695, %v421_v17  ;;  %v430_v22 = vmul.f32 1.442695, %v420_v19 }
 0x2a9   :  { %v411_v24 = vpop.xlane.xlu0 %410 }
 0x2aa   :  { %4187 = vpow2.f32 %v432_v20  ;;  %v423_v26 = vsub.f32 %v3909_v59, %v411_v24 }
 0x2ab   :  { %4189 = vpow2.f32 %v430_v22 }
 0x2ac   :  { %v436_v29 = vmul.f32 1.442695, %v423_v26 }
 0x2ad   :  { %v408_v30 = vpop.xlane.xlu0 %407  ;;  %v414_v53 = vpop.xlane.xlu1 %413 }
 0x2ae   :  { %4191 = vpow2.f32 %v436_v29  ;;  %v422_v31 = vsub.f32 %v375_v60, %v408_v30  ;;  %v424_v54 = vsub.f32 %v385_v63, %v414_v53 }
 0x2b0   :  { %v434_v32 = vmul.f32 1.442695, %v422_v31  ;;  %v438_v56 = vmul.f32 1.442695, %v424_v54 }
 0x2b1   :  { %v4184_v33 = vpop.eup %4183  ;;  %v417_v51 = vpop.xlane.xlu0 %416 }
 0x2b2   :  { %4193 = vpow2.f32 %v434_v32  ;;  %v445_v34 = vsel %vm37_vm0, %v4184_v33, 0.0  ;;  %v425_v52 = vsub.f32 %v3912_v62, %v417_v51  ;;  %v721_v62 = vpop.permute.xlu1 %720 }
 0x2b3   :  { %v4186_v35 = vpop.eup %4185  ;;  %446 = vadd.xlane.f32.xlu0 %v445_v34 }
 0x2b4   :  { %v442_v36 = vsel %vm37_vm0, %v4186_v35, 0.0  ;;  %v440_v55 = vmul.f32 1.442695, %v425_v52 }
 0x2b5   :  { %443 = vadd.xlane.f32.xlu1 %v442_v36  ;;  %v844_v61 = vpop.permute.xlu0 %843 }
 0x2b6   :  { %4195 = vpow2.f32 %v440_v55 }
 0x2b7   :  { %v4188_v37 = vpop.eup %4187  ;;  %4197 = vpow2.f32 %v438_v56 }
 0x2b8   :  { %v4190_v38 = vpop.eup %4189  ;;  %v451_v39 = vsel %vm37_vm0, %v4188_v37, 0.0 }
 0x2b9   :  { %452 = vadd.xlane.f32.xlu0 %v451_v39  ;;  %v448_v40 = vsel %vm37_vm0, %v4190_v38, 0.0 }
 0x2ba   :  { %449 = vadd.xlane.f32.xlu1 %v448_v40 }
 0x2bb   :  { %v4192_v42 = vpop.eup %4191 }
 0x2bc   :  { %v457_v46 = vsel %vm37_vm0, %v4192_v42, 0.0 }
 0x2bd   :  { %458 = vadd.xlane.f32.xlu0 %v457_v46 }
 0x2bf   :  { %v4573_v48 = vpop.eup %4193 }
 0x2c0   :  { %v454_v49 = vsel %vm37_vm0, %v4573_v48, 0.0 }
 0x2c1   :  { %455 = vadd.xlane.f32.xlu1 %v454_v49 }
 0x2c3   :  { %v4581_v57 = vpop.eup %4195 }
 0x2c4   :  { %v463_v58 = vsel %vm37_vm0, %v4581_v57, 0.0  ;;  %v4585_v59 = vpop.eup %4197 }
 0x2c5   :  { %v460_v60 = vsel %vm37_vm0, %v4585_v59, 0.0 }
 0x2d2   :  { %841 = vrot.lane.b32.xlu1 %v4468_v23, %s4360_s16 }
 0x2d3   :  { %722 = vrot.lane.b32.xlu0 %v4461_v18, %s4361_s17 }
 0x2f2   :  { %464 = vadd.xlane.f32.xlu0 %v463_v58 }
 0x2f6   :  { %461 = vadd.xlane.f32.xlu1 %v460_v60 }
 0x307   :  { %835 = vrot.lane.b32.xlu1 %v4477_v27, %s4361_s17 }
 0x308   :  { %833 = vrot.lane.b32.xlu0 %v4468_v23, %s4361_s17 }
 0x30b   :  { %839 = vrot.lane.b32.xlu1 %v4471_v25, %s4361_s17 }
 0x30c   :  { %837 = vrot.lane.b32.xlu0 %v4479_v28, %s4361_s17 }
 0x33c   :  { %v447_v63 = vpop.xlane.xlu0 %446 }
 0x33d   :  { %4199 = vrcp.f32 %v447_v63 }
 0x33e   :  { %v444_v0 = vpop.xlane.xlu1 %443 }
 0x33f   :  { %4201 = vrcp.f32 %v444_v0 }
 0x342   :  { %v453_v1 = vpop.xlane.xlu0 %452 }
 0x343   :  { %4203 = vrcp.f32 %v453_v1  ;;  %v450_v2 = vpop.xlane.xlu1 %449 }
 0x344   :  { %4205 = vrcp.f32 %v450_v2 }
 0x346   :  { %v459_v7 = vpop.xlane.xlu0 %458 }
 0x347   :  { %4207 = vrcp.f32 %v459_v7 }
 0x34a   :  { %v4200_v8 = vpop.eup %4199  ;;  %v456_v9 = vpop.xlane.xlu1 %455 }
 0x34b   :  { %v469_v10 = vmul.f32 %v4200_v8, %v4184_v33  ;;  %4209 = vrcp.f32 %v456_v9 }
 0x34c   :  { %v4202_v11 = vpop.eup %4201 }
 0x34d   :  { %v483_v12 = vmul.f32 0.25, %v469_v10  ;;  %v467_v13 = vmul.f32 %v4202_v11, %v4186_v35 }
 0x34f   :  { %491 = vst.msk [vmem:[#allocation4 + $0x8] sm:$0xff] %vm37_vm0, %v483_v12  ;;  %v482_v15 = vmul.f32 0.25, %v467_v13  ;;  %3921 = vmatprep.mubr.msk.f32.mxu1 %vm37_vm0, %v467_v13 }
 0x350   :  { %v4204_v17 = vpop.eup %4203  ;;  %3922 = vmatmul.mubr.msk.f32.vlgmr.msra.gmra.mxu1 %vm37_vm0, %v469_v10 }
 0x351   :  { %v4206_v19 = vpop.eup %4205  ;;  %490 = vst.msk [vmem:[#allocation4] sm:$0xff] %vm37_vm0, %v482_v15  ;;  %3942 = vmatpush3.xpose.msk.msra.mxu1 %vm179_vm1, %v4540_v44  ;;  %v473_v20 = vmul.f32 %v4204_v17, %v4188_v37 }
 0x352   :  { %3943 = vmatprep.subr.msk.mxu1 %vm179_vm1, %v4530_v41  ;;  %v471_v22 = vmul.f32 %v4206_v19, %v4190_v38 }
 0x353   :  { %v485_v24 = vmul.f32 0.25, %v473_v20 }
 0x354   :  { %v4208_v26 = vpop.eup %4207  ;;  %v484_v29 = vmul.f32 0.25, %v471_v22  ;;  %3924 = vmatprep.mubr.msk.f32.mxu1 %vm37_vm0, %v471_v22 }
 0x355   :  { %v477_v30 = vmul.f32 %v4208_v26, %v4192_v42  ;;  %493 = vst.msk [vmem:[#allocation4 + $0x18] sm:$0xff] %vm37_vm0, %v485_v24  ;;  %3925 = vmatmul.mubr.msk.f32.gmra.mxu1 %vm37_vm0, %v473_v20 }
 0x356   :  { %492 = vst.msk [vmem:[#allocation4 + $0x10] sm:$0xff] %vm37_vm0, %v484_v29  ;;  %3944 = vmatpush3.xpose.msk.msra.mxu1 %vm179_vm1, %v4530_v41  ;;  %3949 = vmatprep.mubr.msk.f32.mxu1 %vm179_vm1, %v4546_v47  ;;  %v723_v41 = vpop.permute.xlu0 %722 }
 0x357   :  { %v487_v44 = vmul.f32 0.25, %v477_v30  ;;  %3945 = vmatprep.subr.msk.mxu1 %vm179_vm1, %v4536_v43 }
 0x358   :  { %v4210_v31 = vpop.eup %4209 }
 0x359   :  { %495 = vst.msk [vmem:[#allocation4 + $0x28] sm:$0xff] %vm37_vm0, %v487_v44  ;;  %v475_v32 = vmul.f32 %v4210_v31, %v4573_v48 }
 0x35a   :  { %3946 = vmatpush3.xpose.msk.msra.mxu1 %vm179_vm1, %v4536_v43  ;;  %v842_v43 = vpop.permute.xlu1 %841 }
 0x35b   :  { %3947 = vmatprep.subr.msk.mxu1 %vm179_vm1, %v4542_v45  ;;  %v486_v33 = vmul.f32 0.25, %v475_v32  ;;  %3935 = vmatprep.mubr.msk.f32.mxu0 %vm37_vm0, %v475_v32 }
 0x35c   :  { %3936 = vmatmul.mubr.msk.f32.vlgmr.msra.gmra.mxu0 %vm37_vm0, %v477_v30 }
 0x35d   :  { %494 = vst.msk [vmem:[#allocation4 + $0x20] sm:$0xff] %vm37_vm0, %v486_v33  ;;  %3956 = vmatpush3.xpose.msk.msra.mxu0 %vm179_vm1, %v4548_v50 }
 0x35e   :  { %3948 = vmatpush3.xpose.msk.msra.mxu1 %vm179_vm1, %v4542_v45  ;;  %3957 = vmatprep.subr.msk.mxu0 %vm179_vm1, %v4566_v6 }
 0x361   :  { %3950 = vmatmul.mubr.msk.f32.vlgmr.msra.gmra.mxu1 %vm179_vm1, %v4564_v5  ;;  %3958 = vmatpush3.xpose.msk.msra.mxu0 %vm179_vm1, %v4566_v6 }
 0x362   :  { %3952 = vmatprep.mubr.msk.f32.mxu1 %vm179_vm1, %v721_v62  ;;  %3959 = vmatprep.subr.msk.mxu0 %vm179_vm1, %v844_v61 }
 0x365   :  { %3953 = vmatmul.mubr.msk.f32.gmra.mxu1 %vm179_vm1, %v723_v41  ;;  %3960 = vmatpush3.xpose.msk.msra.mxu0 %vm179_vm1, %v844_v61 }
 0x366   :  { %3961 = vmatprep.subr.msk.mxu0 %vm179_vm1, %v842_v43 }
 0x369   :  { %3962 = vmatpush3.xpose.msk.msra.mxu0 %vm179_vm1, %v842_v43 }
 0x37b   :  { %v465_v45 = vpop.xlane.xlu0 %464 }
 0x37c   :  { %4211 = vrcp.f32 %v465_v45 }
 0x37f   :  { %v462_v47 = vpop.xlane.xlu1 %461  ;;  %v834_v36 = vpop.permute.xlu0 %833 }
 0x380   :  { %4213 = vrcp.f32 %v462_v47 }
 0x383   :  { %v836_v38 = vpop.permute.xlu1 %835  ;;  %v838_v39 = vpop.permute.xlu0 %837 }
 0x387   :  { %v840_v40 = vpop.permute.xlu1 %839 }
 0x389   :  { %v4212_v50 = vpop.eup %4211 }
 0x38a   :  { %v481_v5 = vmul.f32 %v4212_v50, %v4581_v57 }
 0x38c   :  { %v489_v6 = vmul.f32 0.25, %v481_v5 }
 0x38d   :  { %v4214_v34 = vpop.eup %4213 }
 0x38e   :  { %v479_v35 = vmul.f32 %v4214_v34, %v4585_v59  ;;  %497 = vst.msk [vmem:[#allocation4 + $0x38] sm:$0xff] %vm37_vm0, %v489_v6 }
 0x390   :  { %v488_v37 = vmul.f32 0.25, %v479_v35  ;;  %3938 = vmatprep.mubr.msk.f32.mxu0 %vm37_vm0, %v479_v35 }
 0x391   :  { %3939 = vmatmul.mubr.msk.f32.gmra.mxu0 %vm37_vm0, %v481_v5 }
 0x392   :  { %496 = vst.msk [vmem:[#allocation4 + $0x30] sm:$0xff] %vm37_vm0, %v488_v37  ;;  %3963 = vmatprep.mubr.msk.f32.mxu0 %vm179_vm1, %v834_v36 }
 0x395   :  { %3964 = vmatmul.mubr.msk.f32.vlgmr.msra.gmra.mxu0 %vm179_vm1, %v836_v38 }
 0x396   :  { %3966 = vmatprep.mubr.msk.f32.mxu0 %vm179_vm1, %v838_v39 }
 0x399   :  { %3967 = vmatmul.mubr.msk.f32.gmra.mxu0 %vm179_vm1, %v840_v40 }
 0x410   :  { %v4650_v42 = vpop.f32.mrf.mxu1 }
 0x412   :  { %v4652_v46 = vpop.f32.mrf.mxu1 }
 0x415   :  { %v4654_v48 = vpop.f32.mrf.mxu1 }
 0x417   :  { %v4656_v49 = vpop.f32.mrf.mxu1 }
 0x41c   :  { %v4662_v59 = vpop.f32.mrf.mxu0 }
 0x41e   :  { %v4664_v60 = vpop.f32.mrf.mxu0 }
 0x421   :  { %v3951_v51 = vpop.f32.mrf.mxu1 }
 0x422   :  { %v953_v52 = vsel %vm37_vm0, %v3951_v51, -inf }
 0x423   :  { %954 = vmax.xlane.f32.xlu1 %v953_v52  ;;  %v814_v53 = vpop.f32.mrf.mxu1 }
 0x424   :  { %v950_v54 = vsel %vm37_vm0, %v814_v53, -inf }
 0x425   :  { %951 = vmax.xlane.f32.xlu0 %v950_v54  ;;  %v3954_v55 = vpop.f32.mrf.mxu1 }
 0x426   :  { %v959_v58 = vsel %vm37_vm0, %v3954_v55, -inf }
 0x427   :  { %v824_v56 = vpop.f32.mrf.mxu1 }
 0x428   :  { %v956_v57 = vsel %vm37_vm0, %v824_v56, -inf }
 0x429   :  { %957 = vmax.xlane.f32.xlu0 %v956_v57 }
 0x42d   :  { %960 = vmax.xlane.f32.xlu0 %v959_v58 }
 0x451   :  { %v4666_v61 = vpop.f32.mrf.mxu0 }
 0x453   :  { %v4668_v62 = vpop.f32.mrf.mxu0 }
 0x455   :  { %v3965_v63 = vpop.f32.mrf.mxu0 }
 0x456   :  { %v965_v0 = vsel %vm37_vm0, %v3965_v63, -inf }
 0x457   :  { %966 = vmax.xlane.f32.xlu0 %v965_v0  ;;  %v931_v1 = vpop.f32.mrf.mxu0 }
 0x458   :  { %v962_v2 = vsel %vm37_vm0, %v931_v1, -inf }
 0x459   :  { %963 = vmax.xlane.f32.xlu1 %v962_v2  ;;  %v3968_v7 = vpop.f32.mrf.mxu0 }
 0x45a   :  { %v971_v8 = vsel %vm37_vm0, %v3968_v7, -inf }
 0x45b   :  { %972 = vmax.xlane.f32.xlu0 %v971_v8  ;;  %v941_v9 = vpop.f32.mrf.mxu0 }
 0x45c   :  { %v968_v10 = vsel %vm37_vm0, %v941_v9, -inf }
 0x45d   :  { %969 = vmax.xlane.f32.xlu1 %v968_v10 }
 0x46e   :  { %1076 = vrot.lane.b32.xlu1 %v4461_v18, %s4362_s18 }
 0x471   :  { %1074 = vrot.lane.b32.xlu0 %v4466_v21, %s4362_s18 }
 0x472   :  { %1072 = vrot.lane.b32.xlu1 %v4456_v14, %s4362_s18 }
 0x475   :  { %1185 = vrot.lane.b32.xlu0 %v4471_v25, %s4362_s18 }
 0x476   :  { %1070 = vrot.lane.b32.xlu1 %v4458_v16, %s4362_s18 }
 0x47a   :  { %1183 = vrot.lane.b32.xlu1 %v4479_v28, %s4362_s18 }
 0x4ac   :  { %v955_v11 = vpop.xlane.xlu1 %954 }
 0x4ad   :  { %v975_v12 = vsub.f32 %v3951_v51, %v955_v11 }
 0x4ae   :  { %v952_v13 = vpop.xlane.xlu0 %951 }
 0x4af   :  { %v984_v15 = vmul.f32 1.442695, %v975_v12  ;;  %v974_v17 = vsub.f32 %v814_v53, %v952_v13 }
 0x4b1   :  { %4215 = vpow2.f32 %v984_v15  ;;  %v982_v19 = vmul.f32 1.442695, %v974_v17 }
 0x4b2   :  { %v958_v20 = vpop.xlane.xlu0 %957 }
 0x4b3   :  { %4217 = vpow2.f32 %v982_v19  ;;  %v976_v22 = vsub.f32 %v824_v56, %v958_v20 }
 0x4b5   :  { %v986_v24 = vmul.f32 1.442695, %v976_v22  ;;  %v1039_v22 = vld [vmem:[#allocation4 + $0x8] sm:$0xff] }
 0x4b6   :  { %v961_v26 = vpop.xlane.xlu0 %960 }
 0x4b7   :  { %4219 = vpow2.f32 %v986_v24  ;;  %v977_v29 = vsub.f32 %v3954_v55, %v961_v26 }
 0x4b9   :  { %v988_v30 = vmul.f32 1.442695, %v977_v29 }
 0x4bb   :  { %4221 = vpow2.f32 %v988_v30  ;;  %v1038_v30 = vld [vmem:[#allocation4] sm:$0xff] }
 0x4be   :  { %v4686_v44 = vpop.eup %4215 }
 0x4bf   :  { %v1001_v31 = vsel %vm37_vm0, %v4686_v44, 0.0 }
 0x4c0   :  { %v4690_v32 = vpop.eup %4217  ;;  %1002 = vadd.xlane.f32.xlu0 %v1001_v31 }
 0x4c1   :  { %v998_v33 = vsel %vm37_vm0, %v4690_v32, 0.0 }
 0x4c2   :  { %999 = vadd.xlane.f32.xlu1 %v998_v33 }
 0x4c4   :  { %v4694_v41 = vpop.eup %4219 }
 0x4c5   :  { %v1004_v43 = vsel %vm37_vm0, %v4694_v41, 0.0 }
 0x4c6   :  { %1005 = vadd.xlane.f32.xlu1 %v1004_v43  ;;  %v1040_v43 = vld [vmem:[#allocation4 + $0x10] sm:$0xff] }
 0x4c8   :  { %v4698_v45 = vpop.eup %4221 }
 0x4c9   :  { %v1007_v47 = vsel %vm37_vm0, %v4698_v45, 0.0 }
 0x4ca   :  { %1008 = vadd.xlane.f32.xlu0 %v1007_v47 }
 0x4e0   :  { %v967_v50 = vpop.xlane.xlu0 %966 }
 0x4e1   :  { %v979_v5 = vsub.f32 %v3965_v63, %v967_v50 }
 0x4e2   :  { %v964_v6 = vpop.xlane.xlu1 %963 }
 0x4e3   :  { %v992_v34 = vmul.f32 1.442695, %v979_v5  ;;  %v978_v35 = vsub.f32 %v931_v1, %v964_v6  ;;  %v1041_v6 = vld [vmem:[#allocation4 + $0x18] sm:$0xff] }
 0x4e4   :  { %v973_v36 = vpop.xlane.xlu0 %972 }
 0x4e5   :  { %4223 = vpow2.f32 %v992_v34  ;;  %v990_v37 = vmul.f32 1.442695, %v978_v35  ;;  %v981_v38 = vsub.f32 %v3968_v7, %v973_v36 }
 0x4e6   :  { %v970_v39 = vpop.xlane.xlu1 %969 }
 0x4e7   :  { %4225 = vpow2.f32 %v990_v37  ;;  %v996_v40 = vmul.f32 1.442695, %v981_v38  ;;  %v980_v51 = vsub.f32 %v941_v9, %v970_v39 }
 0x4e8   :  { %v1075_v52 = vpop.permute.xlu0 %1074 }
 0x4e9   :  { %4227 = vpow2.f32 %v996_v40  ;;  %v994_v53 = vmul.f32 1.442695, %v980_v51 }
 0x4ea   :  { %v1077_v54 = vpop.permute.xlu1 %1076 }
 0x4eb   :  { %4229 = vpow2.f32 %v994_v53  ;;  %3969 = vmatprep.subr.mxu1 %v1077_v54 }
 0x4ec   :  { %v1186_v55 = vpop.permute.xlu0 %1185  ;;  %3970 = vmatpush3.msra.mxu1 %v1077_v54 }
 0x4ed   :  { %3971 = vmatprep.subr.mxu1 %v1075_v52  ;;  %3983 = vmatprep.subr.mxu0 %v1186_v55 }
 0x4ee   :  { %3972 = vmatpush3.msra.mxu1 %v1075_v52  ;;  %3984 = vmatpush3.msra.mxu0 %v1186_v55  ;;  %v1073_v56 = vpop.permute.xlu1 %1072 }
 0x4ef   :  { %3973 = vmatprep.subr.mxu1 %v1073_v56 }
 0x4f0   :  { %3974 = vmatpush3.msra.mxu1 %v1073_v56 }
 0x4f2   :  { %v4702_v57 = vpop.eup %4223  ;;  %v1071_v58 = vpop.permute.xlu1 %1070 }
 0x4f3   :  { %3975 = vmatprep.subr.mxu1 %v1071_v58  ;;  %v1013_v63 = vsel %vm37_vm0, %v4702_v57, 0.0 }
 0x4f4   :  { %v4706_v0 = vpop.eup %4225  ;;  %1014 = vadd.xlane.f32.xlu0 %v1013_v63  ;;  %3976 = vmatpush3.msra.mxu1 %v1071_v58  ;;  %v1043_v63 = vld [vmem:[#allocation4 + $0x28] sm:$0xff] }
 0x4f5   :  { %v1010_v1 = vsel %vm37_vm0, %v4706_v0, 0.0 }
 0x4f6   :  { %v4710_v2 = vpop.eup %4227  ;;  %1011 = vadd.xlane.f32.xlu1 %v1010_v1  ;;  %v1184_v7 = vpop.permute.xlu1 %1183 }
 0x4f7   :  { %3985 = vmatprep.subr.mxu0 %v1184_v7  ;;  %v1019_v8 = vsel %vm37_vm0, %v4710_v2, 0.0 }
 0x4f8   :  { %v4714_v9 = vpop.eup %4229  ;;  %1020 = vadd.xlane.f32.xlu0 %v1019_v8  ;;  %3986 = vmatpush3.msra.mxu0 %v1184_v7 }
 0x4f9   :  { %v1016_v10 = vsel %vm37_vm0, %v4714_v9, 0.0 }
 0x4fa   :  { %1017 = vadd.xlane.f32.xlu1 %v1016_v10 }
 0x50b   :  { %1179 = vrot.lane.b32.xlu1 %v4468_v23, %s4362_s18 }
 0x50e   :  { %1181 = vrot.lane.b32.xlu0 %v4477_v27, %s4362_s18 }
 0x50f   :  { %1568 = vrot.lane.b32.xlu1 %v4461_v18, %s4363_s19 }
 0x512   :  { %1289 = vrot.lane.b32.xlu0 %v4413_v3, %s4364_s20 }
 0x513   :  { %1422 = vrot.lane.b32.xlu1 %v4419_v4, %s4364_s20 }
 0x516   :  { %1566 = vrot.lane.b32.xlu0 %v4466_v21, %s4363_s19 }
 0x517   :  { %1685 = vrot.lane.b32.xlu1 %v4471_v25, %s4363_s19 }
 0x51a   :  { %1564 = vrot.lane.b32.xlu0 %v4456_v14, %s4363_s19 }
 0x51b   :  { %1683 = vrot.lane.b32.xlu1 %v4479_v28, %s4363_s19 }
 0x51e   :  { %1562 = vrot.lane.b32.xlu0 %v4458_v16, %s4363_s19 }
 0x51f   :  { %1556 = vrot.lane.b32.xlu1 %v4456_v14, %s4365_s21 }
 0x522   :  { %1554 = vrot.lane.b32.xlu0 %v4458_v16, %s4365_s21 }
 0x523   :  { %1558 = vrot.lane.b32.xlu1 %v4466_v21, %s4365_s21 }
 0x526   :  { %1681 = vrot.lane.b32.xlu0 %v4477_v27, %s4363_s19 }
 0x527   :  { %1679 = vrot.lane.b32.xlu1 %v4468_v23, %s4363_s19 }
 0x52a   :  { %1560 = vrot.lane.b32.xlu0 %v4461_v18, %s4365_s21 }
 0x52b   :  { %1673 = vrot.lane.b32.xlu1 %v4477_v27, %s4365_s21 }
 0x52e   :  { %1671 = vrot.lane.b32.xlu0 %v4468_v23, %s4365_s21 }
 0x52f   :  { %1677 = vrot.lane.b32.xlu1 %v4471_v25, %s4365_s21 }
 0x532   :  { %1675 = vrot.lane.b32.xlu0 %v4479_v28, %s4365_s21 }
 0x549   :  { %v1003_v3 = vpop.xlane.xlu0 %1002 }
 0x54a   :  { %4231 = vrcp.f32 %v1003_v3  ;;  %v1042_v3 = vld [vmem:[#allocation4 + $0x20] sm:$0xff] }
 0x54b   :  { %v1000_v4 = vpop.xlane.xlu1 %999 }
 0x54c   :  { %4233 = vrcp.f32 %v1000_v4 }
 0x54f   :  { %v1006_v11 = vpop.xlane.xlu1 %1005 }
 0x550   :  { %4235 = vrcp.f32 %v1006_v11 }
 0x553   :  { %v1009_v12 = vpop.xlane.xlu0 %1008 }
 0x554   :  { %4237 = vrcp.f32 %v1009_v12 }
 0x557   :  { %v4232_v13 = vpop.eup %4231 }
 0x558   :  { %v1025_v15 = vmul.f32 %v4232_v13, %v4686_v44 }
 0x559   :  { %v4234_v17 = vpop.eup %4233 }
 0x55a   :  { %v1047_v19 = vmul.f32 0.25, %v1025_v15  ;;  %v1023_v20 = vmul.f32 %v4234_v17, %v4690_v32 }
 0x55c   :  { %v1055_v24 = vadd.f32 %v1047_v19, %v1039_v22  ;;  %v1046_v26 = vmul.f32 0.25, %v1023_v20  ;;  %3977 = vmatprep.mubr.msk.f32.mxu1 %vm37_vm0, %v1023_v20  ;;  %v1044_v19 = vld [vmem:[#allocation4 + $0x30] sm:$0xff] }
 0x55d   :  { %v4236_v29 = vpop.eup %4235  ;;  %3978 = vmatmul.mubr.msk.f32.vlgmr.msra.gmra.mxu1 %vm37_vm0, %v1025_v15  ;;  %v1045_v15 = vld [vmem:[#allocation4 + $0x38] sm:$0xff] }
 0x55e   :  { %1063 = vst.msk [vmem:[#allocation4 + $0x8] sm:$0xff] %vm37_vm0, %v1055_v24  ;;  %v1054_v31 = vadd.f32 %v1046_v26, %v1038_v30  ;;  %v1027_v33 = vmul.f32 %v4236_v29, %v4694_v41 }
 0x560   :  { %1062 = vst.msk [vmem:[#allocation4] sm:$0xff] %vm37_vm0, %v1054_v31  ;;  %v1048_v44 = vmul.f32 0.25, %v1027_v33  ;;  %3980 = vmatprep.mubr.msk.f32.mxu1 %vm37_vm0, %v1027_v33 }
 0x561   :  { %v4238_v32 = vpop.eup %4237 }
 0x562   :  { %v1056_v47 = vadd.f32 %v1048_v44, %v1040_v43  ;;  %v1029_v50 = vmul.f32 %v4238_v32, %v4698_v45 }
 0x564   :  { %1064 = vst.msk [vmem:[#allocation4 + $0x10] sm:$0xff] %vm37_vm0, %v1056_v47  ;;  %v1049_v5 = vmul.f32 0.25, %v1029_v50  ;;  %3981 = vmatmul.mubr.msk.f32.gmra.mxu1 %vm37_vm0, %v1029_v50 }
 0x566   :  { %v1057_v34 = vadd.f32 %v1049_v5, %v1041_v6 }
 0x568   :  { %1065 = vst.msk [vmem:[#allocation4 + $0x18] sm:$0xff] %vm37_vm0, %v1057_v34 }
 0x57d   :  { %v1015_v41 = vpop.xlane.xlu0 %1014 }
 0x57e   :  { %4239 = vrcp.f32 %v1015_v41 }
 0x57f   :  { %v1012_v35 = vpop.xlane.xlu1 %1011 }
 0x580   :  { %4241 = vrcp.f32 %v1012_v35 }
 0x581   :  { %v1021_v36 = vpop.xlane.xlu0 %1020 }
 0x582   :  { %4243 = vrcp.f32 %v1021_v36 }
 0x583   :  { %v1018_v37 = vpop.xlane.xlu1 %1017 }
 0x584   :  { %4245 = vrcp.f32 %v1018_v37 }
 0x585   :  { %v1182_v38 = vpop.permute.xlu0 %1181 }
 0x586   :  { %3987 = vmatprep.subr.mxu0 %v1182_v38 }
 0x587   :  { %3988 = vmatpush3.msra.mxu0 %v1182_v38  ;;  %v1180_v45 = vpop.permute.xlu1 %1179 }
 0x588   :  { %3989 = vmatprep.subr.mxu0 %v1180_v45 }
 0x589   :  { %v1290_v39 = vpop.permute.xlu0 %1289  ;;  %3990 = vmatpush3.msra.mxu0 %v1180_v45 }
 0x58a   :  { %3997 = vmatprep.subr.mxu1 %v1290_v39 }
 0x58b   :  { %v4240_v40 = vpop.eup %4239  ;;  %3998 = vmatpush3.msra.mxu1 %v1290_v39  ;;  %v4754_v51 = vpop.permute.xlu1 %1568 }
 0x58c   :  { %v1033_v52 = vmul.f32 %v4240_v40, %v4702_v57  ;;  %4025 = vmatprep.subr.msk.mxu1 %vm179_vm1, %v4754_v51 }
 0x58d   :  { %v4242_v53 = vpop.eup %4241  ;;  %v4759_v54 = vpop.permute.xlu0 %1566 }
 0x58e   :  { %v1051_v55 = vmul.f32 0.25, %v1033_v52  ;;  %v1031_v56 = vmul.f32 %v4242_v53, %v4706_v0 }
 0x58f   :  { %v4244_v58 = vpop.eup %4243  ;;  %v1423_v1 = vpop.permute.xlu1 %1422 }
 0x590   :  { %v1059_v7 = vadd.f32 %v1051_v55, %v1043_v63  ;;  %v1050_v8 = vmul.f32 0.25, %v1031_v56  ;;  %3991 = vmatprep.mubr.msk.f32.mxu0 %vm37_vm0, %v1031_v56  ;;  %4011 = vmatprep.subr.mxu0 %v1423_v1  ;;  %v1037_v10 = vmul.f32 %v4244_v58, %v4710_v2 }
 0x591   :  { %v4246_v57 = vpop.eup %4245  ;;  %v1565_v4 = vpop.permute.xlu0 %1564  ;;  %3992 = vmatmul.mubr.msk.f32.vlgmr.msra.gmra.mxu0 %vm37_vm0, %v1033_v52 }
 0x592   :  { %1067 = vst.msk [vmem:[#allocation4 + $0x28] sm:$0xff] %vm37_vm0, %v1059_v7  ;;  %v1058_v11 = vadd.f32 %v1050_v8, %v1042_v3  ;;  %4012 = vmatpush3.msra.mxu0 %v1423_v1  ;;  %v1035_v0 = vmul.f32 %v4246_v57, %v4714_v9  ;;  %v1053_v12 = vmul.f32 0.25, %v1037_v10 }
 0x593   :  { %v1686_v13 = vpop.permute.xlu1 %1685 }
 0x594   :  { %1066 = vst.msk [vmem:[#allocation4 + $0x20] sm:$0xff] %vm37_vm0, %v1058_v11  ;;  %v1052_v17 = vmul.f32 0.25, %v1035_v0  ;;  %3994 = vmatprep.mubr.msk.f32.mxu0 %vm37_vm0, %v1035_v0  ;;  %4039 = vmatprep.subr.msk.mxu0 %vm179_vm1, %v1686_v13  ;;  %v1061_v2 = vadd.f32 %v1053_v12, %v1045_v15 }
 0x595   :  { %v1563_v20 = vpop.permute.xlu0 %1562  ;;  %3995 = vmatmul.mubr.msk.f32.gmra.mxu0 %vm37_vm0, %v1037_v10 }
 0x596   :  { %v1060_v22 = vadd.f32 %v1052_v17, %v1044_v19  ;;  %1069 = vst.msk [vmem:[#allocation4 + $0x38] sm:$0xff] %vm37_vm0, %v1061_v2  ;;  %4013 = vmatprep.mubr.msk.f32.mxu0 %vm179_vm1, %v4652_v46 }
 0x597   :  { %v1684_v9 = vpop.permute.xlu1 %1683 }
 0x598   :  { %1068 = vst.msk [vmem:[#allocation4 + $0x30] sm:$0xff] %vm37_vm0, %v1060_v22 }
 0x599   :  { %v1555_v24 = vpop.permute.xlu0 %1554  ;;  %4014 = vmatmul.mubr.msk.f32.vlgmr.msra.gmra.mxu0 %vm179_vm1, %v4650_v42 }
 0x59a   :  { %4040 = vmatpush3.xpose.msk.msra.mxu0 %vm179_vm1, %v1686_v13  ;;  %4016 = vmatprep.mubr.msk.f32.mxu0 %vm179_vm1, %v4656_v49 }
 0x59b   :  { %4041 = vmatprep.subr.msk.mxu0 %vm179_vm1, %v1684_v9  ;;  %v1557_v26 = vpop.permute.xlu1 %1556 }
 0x59d   :  { %v1682_v29 = vpop.permute.xlu0 %1681  ;;  %4017 = vmatmul.mubr.msk.f32.gmra.mxu0 %vm179_vm1, %v4654_v48 }
 0x59e   :  { %4042 = vmatpush3.xpose.msk.msra.mxu0 %vm179_vm1, %v1684_v9  ;;  %4019 = vmatprep.mubr.msk.f32.mxu0 %vm179_vm1, %v4664_v60 }
 0x59f   :  { %4043 = vmatprep.subr.msk.mxu0 %vm179_vm1, %v1682_v29  ;;  %v1559_v42 = vpop.permute.xlu1 %1558 }
 0x5a1   :  { %v1561_v46 = vpop.permute.xlu0 %1560  ;;  %4020 = vmatmul.mubr.msk.f32.gmra.mxu0 %vm179_vm1, %v4662_v59 }
 0x5a2   :  { %4044 = vmatpush3.xpose.msk.msra.mxu0 %vm179_vm1, %v1682_v29  ;;  %4022 = vmatprep.mubr.msk.f32.mxu0 %vm179_vm1, %v4668_v62 }
 0x5a3   :  { %v1680_v49 = vpop.permute.xlu1 %1679 }
 0x5a4   :  { %4045 = vmatprep.subr.msk.mxu0 %vm179_vm1, %v1680_v49 }
 0x5a5   :  { %v1672_v48 = vpop.permute.xlu0 %1671  ;;  %4023 = vmatmul.mubr.msk.f32.gmra.mxu0 %vm179_vm1, %v4666_v61 }
 0x5a6   :  { %4046 = vmatpush3.xpose.msk.msra.mxu0 %vm179_vm1, %v1680_v49  ;;  %4047 = vmatprep.mubr.msk.f32.mxu0 %vm179_vm1, %v1672_v48 }
 0x5a7   :  { %v1674_v60 = vpop.permute.xlu1 %1673 }
 0x5a9   :  { %v1676_v30 = vpop.permute.xlu0 %1675  ;;  %4048 = vmatmul.mubr.msk.f32.vlgmr.msra.gmra.mxu0 %vm179_vm1, %v1674_v60 }
 0x5aa   :  { %4050 = vmatprep.mubr.msk.f32.mxu0 %vm179_vm1, %v1676_v30 }
 0x5ab   :  { %v1678_v59 = vpop.permute.xlu1 %1677 }
 0x5ad   :  { %4051 = vmatmul.mubr.msk.f32.gmra.mxu0 %vm179_vm1, %v1678_v59 }
 0x61d   :  { %v3979_v62 = vpop.f32.mrf.mxu1 }
 0x61f   :  { %v1160_v31 = vpop.f32.mrf.mxu1 }
 0x620   :  { %3999 = vmatprep.mubr.msk.f32.mxu1 %vm179_vm1, %v1160_v31 }
 0x621   :  { %4000 = vmatmul.mubr.msk.f32.vlgmr.msra.gmra.mxu1 %vm179_vm1, %v3979_v62 }
 0x622   :  { %4026 = vmatpush3.xpose.msk.msra.mxu1 %vm179_vm1, %v4754_v51 }
 0x623   :  { %4027 = vmatprep.subr.msk.mxu1 %vm179_vm1, %v4759_v54 }
 0x624   :  { %v3982_v61 = vpop.f32.mrf.mxu1 }
 0x626   :  { %4028 = vmatpush3.xpose.msk.msra.mxu1 %vm179_vm1, %v4759_v54  ;;  %v1170_v33 = vpop.f32.mrf.mxu1 }
 0x627   :  { %4029 = vmatprep.subr.msk.mxu1 %vm179_vm1, %v1565_v4  ;;  %4002 = vmatprep.mubr.msk.f32.mxu1 %vm179_vm1, %v1170_v33 }
 0x628   :  { %4003 = vmatmul.mubr.msk.f32.gmra.mxu1 %vm179_vm1, %v3982_v61 }
 0x62a   :  { %4030 = vmatpush3.xpose.msk.msra.mxu1 %vm179_vm1, %v1565_v4 }
 0x62b   :  { %4031 = vmatprep.subr.msk.mxu1 %vm179_vm1, %v1563_v20 }
 0x62e   :  { %4032 = vmatpush3.xpose.msk.msra.mxu1 %vm179_vm1, %v1563_v20 }
 0x651   :  { %v3993_v44 = vpop.f32.mrf.mxu0 }
 0x653   :  { %v1269_v32 = vpop.f32.mrf.mxu0 }
 0x654   :  { %4005 = vmatprep.mubr.msk.f32.mxu1 %vm179_vm1, %v1269_v32 }
 0x655   :  { %v3996_v43 = vpop.f32.mrf.mxu0  ;;  %4006 = vmatmul.mubr.msk.f32.gmra.mxu1 %vm179_vm1, %v3993_v44 }
 0x657   :  { %v1279_v47 = vpop.f32.mrf.mxu0 }
 0x658   :  { %4008 = vmatprep.mubr.msk.f32.mxu1 %vm179_vm1, %v1279_v47 }
 0x659   :  { %4009 = vmatmul.mubr.msk.f32.gmra.mxu1 %vm179_vm1, %v3996_v43  ;;  %v4822_v50 = vpop.f32.mrf.mxu0 }
 0x65a   :  { %4033 = vmatprep.mubr.msk.f32.mxu1 %vm179_vm1, %v1555_v24 }
 0x65b   :  { %v4824_v5 = vpop.f32.mrf.mxu0 }
 0x65d   :  { %4034 = vmatmul.mubr.msk.f32.vlgmr.msra.gmra.mxu1 %vm179_vm1, %v1557_v26  ;;  %v4826_v6 = vpop.f32.mrf.mxu0 }
 0x65e   :  { %4036 = vmatprep.mubr.msk.f32.mxu1 %vm179_vm1, %v1559_v42 }
 0x65f   :  { %v4828_v34 = vpop.f32.mrf.mxu0 }
 0x661   :  { %4037 = vmatmul.mubr.msk.f32.gmra.mxu1 %vm179_vm1, %v1561_v46  ;;  %v4830_v41 = vpop.f32.mrf.mxu0 }
 0x663   :  { %v4834_v36 = vpop.f32.mrf.mxu0 }
 0x665   :  { %v4838_v38 = vpop.f32.mrf.mxu0 }
 0x667   :  { %v4842_v39 = vpop.f32.mrf.mxu0 }
 0x669   :  { %v4049_v52 = vpop.f32.mrf.mxu0 }
 0x66a   :  { %v1803_v13 = vsel %vm37_vm0, %v4049_v52, -inf }
 0x66b   :  { %v1769_v55 = vpop.f32.mrf.mxu0 }
 0x66c   :  { %v1800_v57 = vsel %vm37_vm0, %v1769_v55, -inf }
 0x66d   :  { %v4052_v1 = vpop.f32.mrf.mxu0 }
 0x66e   :  { %v1809_v15 = vsel %vm37_vm0, %v4052_v1, -inf }
 0x66f   :  { %v1779_v3 = vpop.f32.mrf.mxu0 }
 0x670   :  { %v1806_v0 = vsel %vm37_vm0, %v1779_v3, -inf }
 0x6e1   :  { %v4832_v35 = vpop.f32.mrf.mxu1 }
 0x6e3   :  { %v4836_v37 = vpop.f32.mrf.mxu1 }
 0x6e8   :  { %v4840_v45 = vpop.f32.mrf.mxu1 }
 0x6ea   :  { %v4844_v40 = vpop.f32.mrf.mxu1 }
 0x715   :  { %v4846_v51 = vpop.f32.mrf.mxu1 }
 0x717   :  { %v4848_v53 = vpop.f32.mrf.mxu1 }
 0x719   :  { %v4850_v54 = vpop.f32.mrf.mxu1 }
 0x71b   :  { %v4852_v56 = vpop.f32.mrf.mxu1 }
 0x71d   :  { %v4854_v58 = vpop.f32.mrf.mxu1 }
 0x71e   :  { %v1791_v63 = vsel %vm37_vm0, %v4854_v58, -inf }
 0x71f   :  { %1792 = vmax.xlane.f32.xlu1 %v1791_v63  ;;  %v1652_v7 = vpop.f32.mrf.mxu1 }
 0x720   :  { %v1788_v8 = vsel %vm37_vm0, %v1652_v7, -inf }
 0x721   :  { %1789 = vmax.xlane.f32.xlu0 %v1788_v8  ;;  %v4859_v10 = vpop.f32.mrf.mxu1 }
 0x722   :  { %v1797_v12 = vsel %vm37_vm0, %v4859_v10, -inf }
 0x723   :  { %v1662_v4 = vpop.f32.mrf.mxu1  ;;  %1801 = vmax.xlane.f32.xlu1 %v1800_v57 }
 0x724   :  { %v1794_v11 = vsel %vm37_vm0, %v1662_v4, -inf }
 0x725   :  { %1795 = vmax.xlane.f32.xlu0 %v1794_v11 }
 0x727   :  { %1807 = vmax.xlane.f32.xlu1 %v1806_v0 }
 0x729   :  { %1798 = vmax.xlane.f32.xlu0 %v1797_v12 }
 0x72d   :  { %1804 = vmax.xlane.f32.xlu0 %v1803_v13 }
 0x731   :  { %1810 = vmax.xlane.f32.xlu0 %v1809_v15 }
 0x7a8   :  { %v1793_v17 = vpop.xlane.xlu1 %1792 }
 0x7aa   :  { %v1790_v2 = vpop.xlane.xlu0 %1789 }
 0x7ac   :  { %v1802_v19 = vpop.xlane.xlu1 %1801 }
 0x7ad   :  { %v1816_v20 = vsub.f32 %v1769_v55, %v1802_v19  ;;  %v1813_v55 = vsub.f32 %v4854_v58, %v1793_v17  ;;  %v4311_v17 = vld [vmem:[%s5263_s1 + $0x10] sm:$0xff] }
 0x7ae   :  { %v1796_v22 = vpop.xlane.xlu0 %1795 }
 0x7af   :  { %v1828_v9 = vmul.f32 1.442695, %v1816_v20  ;;  %v1822_v8 = vmul.f32 1.442695, %v1813_v55 }
 0x7b0   :  { %v1808_v24 = vpop.xlane.xlu1 %1807 }
 0x7b1   :  { %4247 = vpow2.f32 %v1828_v9  ;;  %v1818_v26 = vsub.f32 %v1779_v3, %v1808_v24 }
 0x7b2   :  { %v1799_v29 = vpop.xlane.xlu0 %1798 }
 0x7b3   :  { %v1832_v42 = vmul.f32 1.442695, %v1818_v26  ;;  %v1815_v57 = vsub.f32 %v4859_v10, %v1799_v29 }
 0x7b5   :  { %4249 = vpow2.f32 %v1832_v42  ;;  %v1826_v11 = vmul.f32 1.442695, %v1815_v57 }
 0x7b6   :  { %v1805_v46 = vpop.xlane.xlu0 %1804 }
 0x7b7   :  { %v1817_v49 = vsub.f32 %v4049_v52, %v1805_v46  ;;  %v1812_v52 = vsub.f32 %v1652_v7, %v1790_v2 }
 0x7b9   :  { %v1830_v48 = vmul.f32 1.442695, %v1817_v49  ;;  %v1820_v63 = vmul.f32 1.442695, %v1812_v52 }
 0x7ba   :  { %v1811_v60 = vpop.xlane.xlu0 %1810 }
 0x7bb   :  { %4251 = vpow2.f32 %v1830_v48  ;;  %v1819_v30 = vsub.f32 %v4052_v1, %v1811_v60  ;;  %v1814_v1 = vsub.f32 %v1662_v4, %v1796_v22  ;;  %v1880_v48 = vld [vmem:[#allocation4 + $0x20] sm:$0xff] }
 0x7bd   :  { %v1834_v59 = vmul.f32 1.442695, %v1819_v30  ;;  %v1824_v3 = vmul.f32 1.442695, %v1814_v1  ;;  %v1881_v1 = vld [vmem:[#allocation4 + $0x28] sm:$0xff] }
 0x7be   :  { %v4868_v62 = vpop.eup %4247 }
 0x7bf   :  { %4253 = vpow2.f32 %v1834_v59  ;;  %v1848_v31 = vsel %vm37_vm0, %v4868_v62, 0.0 }
 0x7c0   :  { %1849 = vadd.xlane.f32.xlu1 %v1848_v31  ;;  %4255 = vpow2.f32 %v1820_v63 }
 0x7c1   :  { %4257 = vpow2.f32 %v1822_v8 }
 0x7c2   :  { %v4872_v61 = vpop.eup %4249  ;;  %4259 = vpow2.f32 %v1824_v3 }
 0x7c3   :  { %v1854_v33 = vsel %vm37_vm0, %v4872_v61, 0.0  ;;  %4261 = vpow2.f32 %v1826_v11  ;;  %v1883_v11 = vld [vmem:[#allocation4 + $0x38] sm:$0xff] }
 0x7c4   :  { %1855 = vadd.xlane.f32.xlu1 %v1854_v33 }
 0x7c8   :  { %v4876_v44 = vpop.eup %4251 }
 0x7c9   :  { %v1851_v32 = vsel %vm37_vm0, %v4876_v44, 0.0 }
 0x7ca   :  { %1852 = vadd.xlane.f32.xlu0 %v1851_v32  ;;  %v1882_v32 = vld [vmem:[#allocation4 + $0x30] sm:$0xff] }
 0x7cc   :  { %v4880_v43 = vpop.eup %4253 }
 0x7cd   :  { %v1857_v47 = vsel %vm37_vm0, %v4880_v43, 0.0  ;;  %v4898_v0 = vpop.eup %4255 }
 0x7ce   :  { %1858 = vadd.xlane.f32.xlu0 %v1857_v47  ;;  %v4900_v12 = vpop.eup %4257  ;;  %v1836_v7 = vsel %vm37_vm0, %v4898_v0, 0.0 }
 0x7cf   :  { %v4904_v13 = vpop.eup %4259  ;;  %v1839_v58 = vsel %vm37_vm0, %v4900_v12, 0.0 }
 0x7d0   :  { %v4908_v10 = vpop.eup %4261  ;;  %v1842_v4 = vsel %vm37_vm0, %v4904_v13, 0.0 }
 0x7d1   :  { %v1845_v15 = vsel %vm37_vm0, %v4908_v10, 0.0 }
 0x7d5   :  { %1914 = vrot.lane.b32.xlu1 %v4461_v18, %s4366_s22 }
 0x7d9   :  { %1910 = vrot.lane.b32.xlu1 %v4456_v14, %s4366_s22 }
 0x7dd   :  { %1908 = vrot.lane.b32.xlu1 %v4458_v16, %s4366_s22 }
 0x7e1   :  { %2021 = vrot.lane.b32.xlu1 %v4479_v28, %s4366_s22 }
 0x7e4   :  { %1912 = vrot.lane.b32.xlu0 %v4466_v21, %s4366_s22 }
 0x7e8   :  { %2023 = vrot.lane.b32.xlu0 %v4471_v25, %s4366_s22 }
 0x805   :  { %1837 = vadd.xlane.f32.xlu1 %v1836_v7 }
 0x807   :  { %1840 = vadd.xlane.f32.xlu0 %v1839_v58 }
 0x809   :  { %1843 = vadd.xlane.f32.xlu1 %v1842_v4 }
 0x80b   :  { %1846 = vadd.xlane.f32.xlu0 %v1845_v15 }
 0x81a   :  { %2017 = vrot.lane.b32.xlu1 %v4468_v23, %s4366_s22 }
 0x81e   :  { %2279 = vrot.lane.b32.xlu1 %v4466_v21, %s4367_s23 }
 0x821   :  { %2019 = vrot.lane.b32.xlu0 %v4477_v27, %s4366_s22 }
 0x822   :  { %2277 = vrot.lane.b32.xlu1 %v4456_v14, %s4367_s23 }
 0x825   :  { %2281 = vrot.lane.b32.xlu0 %v4461_v18, %s4367_s23 }
 0x826   :  { %2275 = vrot.lane.b32.xlu1 %v4458_v16, %s4367_s23 }
 0x829   :  { %2127 = vrot.lane.b32.xlu0 %v4311_v17, %s4364_s20 }
 0x82a   :  { %2267 = vrot.lane.b32.xlu1 %v4458_v16, %s4368_s26 }
 0x82d   :  { %2398 = vrot.lane.b32.xlu0 %v4471_v25, %s4367_s23 }
 0x82e   :  { %2394 = vrot.lane.b32.xlu1 %v4477_v27, %s4367_s23 }
 0x831   :  { %2396 = vrot.lane.b32.xlu0 %v4479_v28, %s4367_s23 }
 0x832   :  { %2273 = vrot.lane.b32.xlu1 %v4461_v18, %s4368_s26 }
 0x835   :  { %2269 = vrot.lane.b32.xlu0 %v4456_v14, %s4368_s26 }
 0x836   :  { %2384 = vrot.lane.b32.xlu1 %v4468_v23, %s4368_s26 }
 0x839   :  { %2271 = vrot.lane.b32.xlu0 %v4466_v21, %s4368_s26 }
 0x83a   :  { %2388 = vrot.lane.b32.xlu1 %v4479_v28, %s4368_s26 }
 0x83d   :  { %2392 = vrot.lane.b32.xlu0 %v4468_v23, %s4367_s23 }
 0x841   :  { %2386 = vrot.lane.b32.xlu0 %v4477_v27, %s4368_s26 }
 0x845   :  { %2390 = vrot.lane.b32.xlu0 %v4471_v25, %s4368_s26 }
 0x849   :  { %v1850_v2 = vpop.xlane.xlu1 %1849 }
 0x84a   :  { %4263 = vrcp.f32 %v1850_v2 }
 0x84d   :  { %v1856_v19 = vpop.xlane.xlu1 %1855 }
 0x84e   :  { %4265 = vrcp.f32 %v1856_v19 }
 0x851   :  { %v1915_v20 = vpop.permute.xlu1 %1914 }
 0x852   :  { %4053 = vmatprep.subr.mxu1 %v1915_v20 }
 0x853   :  { %v1853_v22 = vpop.xlane.xlu0 %1852  ;;  %4054 = vmatpush3.msra.mxu1 %v1915_v20 }
 0x854   :  { %4267 = vrcp.f32 %v1853_v22 }
 0x855   :  { %v1911_v9 = vpop.permute.xlu1 %1910 }
 0x857   :  { %v4264_v24 = vpop.eup %4263  ;;  %v1859_v26 = vpop.xlane.xlu0 %1858 }
 0x858   :  { %4269 = vrcp.f32 %v1859_v26  ;;  %v1869_v29 = vmul.f32 %v4264_v24, %v4868_v62 }
 0x859   :  { %v1909_v49 = vpop.permute.xlu1 %1908 }
 0x85a   :  { %v1888_v42 = vmul.f32 0.25, %v1869_v29  ;;  %4075 = vmatprep.mubr.msk.f32.mxu0 %vm37_vm0, %v1869_v29 }
 0x85b   :  { %v4266_v46 = vpop.eup %4265  ;;  %v1913_v60 = vpop.permute.xlu0 %1912 }
 0x85c   :  { %v1896_v30 = vadd.f32 %v1888_v42, %v1880_v48  ;;  %4055 = vmatprep.subr.mxu1 %v1913_v60  ;;  %v1873_v59 = vmul.f32 %v4266_v46, %v4872_v61  ;;  %v1876_v46 = vld [vmem:[#allocation4] sm:$0xff] }
 0x85d   :  { %4056 = vmatpush3.msra.mxu1 %v1913_v60  ;;  %v2022_v52 = vpop.permute.xlu1 %2021 }
 0x85e   :  { %1904 = vst.msk [vmem:[#allocation4 + $0x20] sm:$0xff] %vm37_vm0, %v1896_v30  ;;  %4057 = vmatprep.subr.mxu1 %v1911_v9  ;;  %v1890_v31 = vmul.f32 0.25, %v1873_v59 }
 0x85f   :  { %v2024_v33 = vpop.permute.xlu0 %2023  ;;  %4058 = vmatpush3.msra.mxu1 %v1911_v9 }
 0x860   :  { %4059 = vmatprep.subr.mxu1 %v1909_v49  ;;  %4067 = vmatprep.subr.mxu0 %v2024_v33  ;;  %v1898_v62 = vadd.f32 %v1890_v31, %v1882_v32 }
 0x861   :  { %v4268_v47 = vpop.eup %4267  ;;  %4060 = vmatpush3.msra.mxu1 %v1909_v49  ;;  %4068 = vmatpush3.msra.mxu0 %v2024_v33 }
 0x862   :  { %v1871_v55 = vmul.f32 %v4268_v47, %v4876_v44  ;;  %4069 = vmatprep.subr.mxu0 %v2022_v52  ;;  %1906 = vst.msk [vmem:[#allocation4 + $0x30] sm:$0xff] %vm37_vm0, %v1898_v62  ;;  %v1878_v62 = vld [vmem:[#allocation4 + $0x10] sm:$0xff] }
 0x863   :  { %4070 = vmatpush3.msra.mxu0 %v2022_v52 }
 0x864   :  { %v1889_v61 = vmul.f32 0.25, %v1871_v55 }
 0x865   :  { %v4270_v63 = vpop.eup %4269 }
 0x866   :  { %v1897_v8 = vadd.f32 %v1889_v61, %v1881_v1  ;;  %v1875_v57 = vmul.f32 %v4270_v63, %v4880_v43 }
 0x868   :  { %1905 = vst.msk [vmem:[#allocation4 + $0x28] sm:$0xff] %vm37_vm0, %v1897_v8  ;;  %v1891_v3 = vmul.f32 0.25, %v1875_v57 }
 0x86a   :  { %v1899_v7 = vadd.f32 %v1891_v3, %v1883_v11 }
 0x86c   :  { %1907 = vst.msk [vmem:[#allocation4 + $0x38] sm:$0xff] %vm37_vm0, %v1899_v7 }
 0x88e   :  { %v1838_v58 = vpop.xlane.xlu1 %1837 }
 0x88f   :  { %4271 = vrcp.f32 %v1838_v58 }
 0x890   :  { %v1841_v44 = vpop.xlane.xlu0 %1840 }
 0x891   :  { %4273 = vrcp.f32 %v1841_v44 }
 0x892   :  { %v1844_v4 = vpop.xlane.xlu1 %1843 }
 0x893   :  { %4275 = vrcp.f32 %v1844_v4 }
 0x894   :  { %v1847_v15 = vpop.xlane.xlu0 %1846 }
 0x895   :  { %4277 = vrcp.f32 %v1847_v15 }
 0x896   :  { %v2018_v17 = vpop.permute.xlu1 %2017 }
 0x898   :  { %v2020_v2 = vpop.permute.xlu0 %2019 }
 0x899   :  { %4071 = vmatprep.subr.mxu0 %v2020_v2 }
 0x89a   :  { %4072 = vmatpush3.msra.mxu0 %v2020_v2  ;;  %v2280_v43 = vpop.permute.xlu1 %2279 }
 0x89b   :  { %4073 = vmatprep.subr.mxu0 %v2018_v17 }
 0x89c   :  { %v4272_v19 = vpop.eup %4271  ;;  %v2282_v20 = vpop.permute.xlu0 %2281  ;;  %4074 = vmatpush3.msra.mxu0 %v2018_v17 }
 0x89d   :  { %4076 = vmatmul.mubr.msk.f32.vlgmr.msra.gmra.mxu0 %vm37_vm0, %v1871_v55  ;;  %4095 = vmatprep.subr.msk.mxu0 %vm179_vm1, %v2282_v20  ;;  %v1861_v22 = vmul.f32 %v4272_v19, %v4898_v0  ;;  %v1879_v55 = vld [vmem:[#allocation4 + $0x18] sm:$0xff] }
 0x89e   :  { %v4274_v9 = vpop.eup %4273  ;;  %4078 = vmatprep.mubr.msk.f32.mxu0 %vm37_vm0, %v1873_v59  ;;  %4096 = vmatpush3.xpose.msk.msra.mxu0 %vm179_vm1, %v2282_v20  ;;  %v2278_v24 = vpop.permute.xlu1 %2277  ;;  %v1877_v59 = vld [vmem:[#allocation4 + $0x8] sm:$0xff] }
 0x89f   :  { %v1863_v26 = vmul.f32 %v4274_v9, %v4900_v12  ;;  %v1884_v29 = vmul.f32 0.25, %v1861_v22  ;;  %4061 = vmatprep.mubr.msk.f32.mxu1 %vm37_vm0, %v1861_v22  ;;  %4097 = vmatprep.subr.msk.mxu0 %vm179_vm1, %v2280_v43 }
 0x8a0   :  { %v4276_v42 = vpop.eup %4275  ;;  %v2128_v49 = vpop.permute.xlu0 %2127 }
 0x8a1   :  { %v1885_v48 = vmul.f32 0.25, %v1863_v26  ;;  %v1892_v60 = vadd.f32 %v1884_v29, %v1876_v46  ;;  %4062 = vmatmul.mubr.msk.f32.vlgmr.msra.gmra.mxu1 %vm37_vm0, %v1863_v26  ;;  %4079 = vmatmul.mubr.msk.f32.gmra.mxu0 %vm37_vm0, %v1875_v57  ;;  %v1865_v0 = vmul.f32 %v4276_v42, %v4904_v13 }
 0x8a2   :  { %v4278_v30 = vpop.eup %4277  ;;  %4098 = vmatpush3.xpose.msk.msra.mxu0 %vm179_vm1, %v2280_v43  ;;  %v2276_v12 = vpop.permute.xlu1 %2275  ;;  %4081 = vmatprep.subr.mxu1 %v2128_v49 }
 0x8a3   :  { %v1893_v31 = vadd.f32 %v1885_v48, %v1877_v59  ;;  %1900 = vst.msk [vmem:[#allocation4] sm:$0xff] %vm37_vm0, %v1892_v60  ;;  %v1886_v33 = vmul.f32 0.25, %v1865_v0  ;;  %4064 = vmatprep.mubr.msk.f32.mxu1 %vm37_vm0, %v1865_v0  ;;  %4099 = vmatprep.subr.msk.mxu0 %vm179_vm1, %v2278_v24  ;;  %v1867_v32 = vmul.f32 %v4278_v30, %v4908_v10 }
 0x8a4   :  { %v2399_v47 = vpop.permute.xlu0 %2398  ;;  %4082 = vmatpush3.msra.mxu1 %v2128_v49  ;;  %v1521_v59 = vadd.f32 %v4822_v50, %v4832_v35  ;;  %v1526_v50 = vadd.f32 %v4828_v34, %v4844_v40  ;;  %v1551_v40 = vadd.f32 %v4838_v38, %v4850_v54 }
 0x8a5   :  { %1901 = vst.msk [vmem:[#allocation4 + $0x8] sm:$0xff] %vm37_vm0, %v1893_v31  ;;  %v1894_v13 = vadd.f32 %v1886_v33, %v1878_v62  ;;  %v1887_v52 = vmul.f32 0.25, %v1867_v32  ;;  %4065 = vmatmul.mubr.msk.f32.gmra.mxu1 %vm37_vm0, %v1867_v32  ;;  %4109 = vmatprep.subr.msk.mxu1 %vm179_vm1, %v2399_v47  ;;  %v1516_v31 = vadd.f32 %v4824_v5, %v4836_v37 }
 0x8a6   :  { %4100 = vmatpush3.xpose.msk.msra.mxu0 %vm179_vm1, %v2278_v24  ;;  %v2268_v61 = vpop.permute.xlu1 %2267  ;;  %v1541_v37 = vadd.f32 %v4830_v41, %v4846_v51  ;;  %v1546_v51 = vadd.f32 %v4842_v39, %v4852_v56 }
 0x8a7   :  { %1902 = vst.msk [vmem:[#allocation4 + $0x10] sm:$0xff] %vm37_vm0, %v1894_v13  ;;  %v1895_v63 = vadd.f32 %v1887_v52, %v1879_v55  ;;  %4101 = vmatprep.subr.msk.mxu0 %vm179_vm1, %v2276_v12  ;;  %4103 = vmatprep.mubr.msk.f32.mxu0 %vm179_vm1, %v2268_v61  ;;  %v1531_v13 = vadd.f32 %v4826_v6, %v4840_v45 }
 0x8a8   :  { %v2397_v10 = vpop.permute.xlu0 %2396  ;;  %v1536_v45 = vadd.f32 %v4834_v36, %v4848_v53 }
 0x8a9   :  { %1903 = vst.msk [vmem:[#allocation4 + $0x18] sm:$0xff] %vm37_vm0, %v1895_v63 }
 0x8aa   :  { %4102 = vmatpush3.xpose.msk.msra.mxu0 %vm179_vm1, %v2276_v12  ;;  %v2395_v1 = vpop.permute.xlu1 %2394 }
 0x8ac   :  { %v2270_v8 = vpop.permute.xlu0 %2269 }
 0x8ad   :  { %4104 = vmatmul.mubr.msk.f32.vlgmr.msra.gmra.mxu0 %vm179_vm1, %v2270_v8 }
 0x8ae   :  { %v2274_v3 = vpop.permute.xlu1 %2273 }
 0x8b0   :  { %v2272_v57 = vpop.permute.xlu0 %2271 }
 0x8b1   :  { %4106 = vmatprep.mubr.msk.f32.mxu0 %vm179_vm1, %v2272_v57 }
 0x8b2   :  { %4107 = vmatmul.mubr.msk.f32.gmra.mxu0 %vm179_vm1, %v2274_v3  ;;  %v2385_v22 = vpop.permute.xlu1 %2384 }
 0x8b4   :  { %v2393_v43 = vpop.permute.xlu0 %2392 }
 0x8b6   :  { %v2389_v49 = vpop.permute.xlu1 %2388 }
 0x8b8   :  { %v2387_v26 = vpop.permute.xlu0 %2386 }
 0x8bc   :  { %v2391_v60 = vpop.permute.xlu0 %2390 }
 0x95d   :  { %v4077_v11 = vpop.f32.mrf.mxu0 }
 0x95f   :  { %v2107_v58 = vpop.f32.mrf.mxu0 }
 0x961   :  { %v4063_v7 = vpop.f32.mrf.mxu1  ;;  %v4080_v15 = vpop.f32.mrf.mxu0 }
 0x963   :  { %v1998_v44 = vpop.f32.mrf.mxu1  ;;  %v2117_v2 = vpop.f32.mrf.mxu0 }
 0x964   :  { %4083 = vmatprep.mubr.msk.f32.mxu1 %vm179_vm1, %v1998_v44 }
 0x965   :  { %v4066_v4 = vpop.f32.mrf.mxu1  ;;  %4084 = vmatmul.mubr.msk.f32.vlgmr.msra.gmra.mxu1 %vm179_vm1, %v4063_v7 }
 0x966   :  { %4110 = vmatpush3.xpose.msk.msra.mxu1 %vm179_vm1, %v2399_v47 }
 0x967   :  { %4111 = vmatprep.subr.msk.mxu1 %vm179_vm1, %v2397_v10  ;;  %v2008_v17 = vpop.f32.mrf.mxu1 }
 0x968   :  { %4086 = vmatprep.mubr.msk.f32.mxu1 %vm179_vm1, %v2008_v17 }
 0x969   :  { %4087 = vmatmul.mubr.msk.f32.gmra.mxu1 %vm179_vm1, %v4066_v4 }
 0x96a   :  { %4112 = vmatpush3.xpose.msk.msra.mxu1 %vm179_vm1, %v2397_v10  ;;  %4089 = vmatprep.mubr.msk.f32.mxu1 %vm179_vm1, %v2107_v58 }
 0x96b   :  { %4113 = vmatprep.subr.msk.mxu1 %vm179_vm1, %v2395_v1 }
 0x96d   :  { %4090 = vmatmul.mubr.msk.f32.gmra.mxu1 %vm179_vm1, %v4077_v11  ;;  %v4105_v19 = vpop.f32.mrf.mxu0 }
 0x96e   :  { %4114 = vmatpush3.xpose.msk.msra.mxu1 %vm179_vm1, %v2395_v1  ;;  %4092 = vmatprep.mubr.msk.f32.mxu1 %vm179_vm1, %v2117_v2  ;;  %v2504_v20 = vsel %vm37_vm0, %v4105_v19, -inf }
 0x96f   :  { %4115 = vmatprep.subr.msk.mxu1 %vm179_vm1, %v2393_v43  ;;  %2505 = vmax.xlane.f32.xlu0 %v2504_v20  ;;  %v2365_v9 = vpop.f32.mrf.mxu0 }
 0x970   :  { %v2501_v24 = vsel %vm37_vm0, %v2365_v9, -inf }
 0x971   :  { %4093 = vmatmul.mubr.msk.f32.gmra.mxu1 %vm179_vm1, %v4080_v15  ;;  %2502 = vmax.xlane.f32.xlu1 %v2501_v24 }
 0x972   :  { %4116 = vmatpush3.xpose.msk.msra.mxu1 %vm179_vm1, %v2393_v43  ;;  %v4108_v29 = vpop.f32.mrf.mxu0  ;;  %4117 = vmatprep.mubr.msk.f32.mxu1 %vm179_vm1, %v2385_v22 }
 0x973   :  { %v2510_v42 = vsel %vm37_vm0, %v4108_v29, -inf }
 0x974   :  { %v2375_v46 = vpop.f32.mrf.mxu0 }
 0x975   :  { %2511 = vmax.xlane.f32.xlu1 %v2510_v42  ;;  %4118 = vmatmul.mubr.msk.f32.vlgmr.msra.gmra.mxu1 %vm179_vm1, %v2387_v26  ;;  %v2507_v48 = vsel %vm37_vm0, %v2375_v46, -inf }
 0x976   :  { %2508 = vmax.xlane.f32.xlu0 %v2507_v48  ;;  %4120 = vmatprep.mubr.msk.f32.mxu1 %vm179_vm1, %v2389_v49 }
 0x979   :  { %4121 = vmatmul.mubr.msk.f32.gmra.mxu1 %vm179_vm1, %v2391_v60 }
 0x9f8   :  { %v2506_v30 = vpop.xlane.xlu0 %2505 }
 0x9f9   :  { %v2526_v33 = vsub.f32 %v4105_v19, %v2506_v30 }
 0x9fa   :  { %v2503_v0 = vpop.xlane.xlu1 %2502 }
 0x9fb   :  { %v2525_v52 = vsub.f32 %v2365_v9, %v2503_v0  ;;  %v2535_v35 = vmul.f32 1.442695, %v2526_v33 }
 0x9fd   :  { %v2533_v8 = vmul.f32 1.442695, %v2525_v52  ;;  %4279 = vpow2.f32 %v2535_v35 }
 0x9fe   :  { %v2512_v62 = vpop.xlane.xlu1 %2511 }
 0x9ff   :  { %v2509_v61 = vpop.xlane.xlu0 %2508  ;;  %v2528_v10 = vsub.f32 %v4108_v29, %v2512_v62  ;;  %4281 = vpow2.f32 %v2533_v8 }
 0xa00   :  { %v2527_v57 = vsub.f32 %v2375_v46, %v2509_v61 }
 0xa01   :  { %v2539_v11 = vmul.f32 1.442695, %v2528_v10 }
 0xa02   :  { %v2537_v58 = vmul.f32 1.442695, %v2527_v57 }
 0xa03   :  { %4283 = vpow2.f32 %v2539_v11 }
 0xa04   :  { %4285 = vpow2.f32 %v2537_v58 }
 0xa0a   :  { %v5033_v19 = vpop.eup %4279 }
 0xa0b   :  { %v2552_v22 = vsel %vm37_vm0, %v5033_v19, 0.0 }
 0xa0c   :  { %v5036_v20 = vpop.eup %4281 }
 0xa0d   :  { %v2549_v24 = vsel %vm37_vm0, %v5036_v20, 0.0 }
 0xa10   :  { %v5040_v9 = vpop.eup %4283 }
 0xa11   :  { %v5044_v26 = vpop.eup %4285  ;;  %v2558_v29 = vsel %vm37_vm0, %v5040_v9, 0.0 }
 0xa12   :  { %v2555_v42 = vsel %vm37_vm0, %v5044_v26, 0.0 }
 0xa25   :  { %v4085_v12 = vpop.f32.mrf.mxu1 }
 0xa26   :  { %v5002_v32 = vadd.f32 %v4085_v12, %v1521_v59 }
 0xa27   :  { %v2220_v47 = vpop.f32.mrf.mxu1 }
 0xa28   :  { %v5006_v55 = vadd.f32 %v2220_v47, %v1516_v31 }
 0xa29   :  { %v4088_v63 = vpop.f32.mrf.mxu1 }
 0xa2a   :  { %v5010_v1 = vadd.f32 %v4088_v63, %v1531_v13 }
 0xa2b   :  { %v2230_v5 = vpop.f32.mrf.mxu1 }
 0xa2c   :  { %v5014_v3 = vadd.f32 %v2230_v5, %v1526_v50 }
 0xa2d   :  { %v4091_v6 = vpop.f32.mrf.mxu1 }
 0xa2e   :  { %v5018_v7 = vadd.f32 %v4091_v6, %v1541_v37 }
 0xa2f   :  { %v2240_v34 = vpop.f32.mrf.mxu1 }
 0xa30   :  { %v5022_v44 = vadd.f32 %v2240_v34, %v1536_v45 }
 0xa31   :  { %v4094_v41 = vpop.f32.mrf.mxu1 }
 0xa32   :  { %v5026_v4 = vadd.f32 %v4094_v41, %v1551_v40 }
 0xa33   :  { %v2250_v36 = vpop.f32.mrf.mxu1 }
 0xa34   :  { %v5028_v53 = vadd.f32 %v2250_v36, %v1546_v51  ;;  %v2590_v51 = vld [vmem:[#allocation4 + $0x8] sm:$0xff] }
 0xa35   :  { %v4119_v15 = vpop.f32.mrf.mxu1 }
 0xa36   :  { %v2516_v17 = vsel %vm37_vm0, %v4119_v15, -inf }
 0xa37   :  { %2517 = vmax.xlane.f32.xlu1 %v2516_v17  ;;  %v2482_v38 = vpop.f32.mrf.mxu1 }
 0xa38   :  { %v2513_v54 = vsel %vm37_vm0, %v2482_v38, -inf }
 0xa39   :  { %2514 = vmax.xlane.f32.xlu0 %v2513_v54  ;;  %v4122_v2 = vpop.f32.mrf.mxu1  ;;  %v2589_v54 = vld [vmem:[#allocation4] sm:$0xff] }
 0xa3a   :  { %v2522_v43 = vsel %vm37_vm0, %v4122_v2, -inf }
 0xa3b   :  { %2523 = vmax.xlane.f32.xlu1 %v2522_v43  ;;  %v2492_v39 = vpop.f32.mrf.mxu1 }
 0xa3c   :  { %v2519_v56 = vsel %vm37_vm0, %v2492_v39, -inf }
 0xa3d   :  { %2520 = vmax.xlane.f32.xlu0 %v2519_v56 }
 0xa3f   :  { %2553 = vadd.xlane.f32.xlu1 %v2552_v22  ;;  %v2591_v22 = vld [vmem:[#allocation4 + $0x10] sm:$0xff] }
 0xa41   :  { %2550 = vadd.xlane.f32.xlu0 %v2549_v24  ;;  %v4312_v24 = vld [vmem:[%s5263_s1 + $0x18] sm:$0xff]  ;;  %s4371_s1 = smov [#allocation4]  }
 0xa43   :  { %2559 = vadd.xlane.f32.xlu1 %v2558_v29 }
 0xa45   :  { %2556 = vadd.xlane.f32.xlu0 %v2555_v42 }
 0xa54   :  { %2625 = vrot.lane.b32.xlu1 %v4466_v21, %s4369_s27 }
 0xa58   :  { %2623 = vrot.lane.b32.xlu1 %v4456_v14, %s4369_s27 }
 0xa5b   :  { %2627 = vrot.lane.b32.xlu0 %v4461_v18, %s4369_s27 }
 0xa5c   :  { %2736 = vrot.lane.b32.xlu1 %v4471_v25, %s4369_s27 }
 0xa5f   :  { %2621 = vrot.lane.b32.xlu0 %v4458_v16, %s4369_s27 }
 0xa63   :  { %2734 = vrot.lane.b32.xlu0 %v4479_v28, %s4369_s27 }
 0xac0   :  { %v2518_v46 = vpop.xlane.xlu1 %2517 }
 0xac1   :  { %v2530_v49 = vsub.f32 %v4119_v15, %v2518_v46 }
 0xac2   :  { %v2515_v48 = vpop.xlane.xlu0 %2514 }
 0xac3   :  { %v2543_v60 = vmul.f32 1.442695, %v2530_v49  ;;  %v2529_v21 = vsub.f32 %v2482_v38, %v2515_v48 }
 0xac4   :  { %v2524_v0 = vpop.xlane.xlu1 %2523 }
 0xac5   :  { %4287 = vpow2.f32 %v2543_v60  ;;  %v2541_v14 = vmul.f32 1.442695, %v2529_v21  ;;  %v2532_v30 = vsub.f32 %v4122_v2, %v2524_v0 }
 0xac6   :  { %v2521_v59 = vpop.xlane.xlu0 %2520 }
 0xac7   :  { %4289 = vpow2.f32 %v2541_v14  ;;  %v2547_v18 = vmul.f32 1.442695, %v2532_v30  ;;  %v2531_v12 = vsub.f32 %v2492_v39, %v2521_v59  ;;  %v2592_v39 = vld [vmem:[#allocation4 + $0x18] sm:$0xff] }
 0xac8   :  { %v2554_v25 = vpop.xlane.xlu1 %2553 }
 0xac9   :  { %4291 = vpow2.f32 %v2547_v18  ;;  %v2545_v31 = vmul.f32 1.442695, %v2531_v12  ;;  %v2594_v18 = vld [vmem:[#allocation4 + $0x28] sm:$0xff] }
 0xaca   :  { %4293 = vrcp.f32 %v2554_v25  ;;  %v2551_v16 = vpop.xlane.xlu0 %2550 }
 0xacb   :  { %4295 = vpow2.f32 %v2545_v31 }
 0xacc   :  { %4297 = vrcp.f32 %v2551_v16  ;;  %v2560_v28 = vpop.xlane.xlu1 %2559 }
 0xacd   :  { %4299 = vrcp.f32 %v2560_v28  ;;  %v2593_v28 = vld [vmem:[#allocation4 + $0x20] sm:$0xff] }
 0xace   :  { %v2557_v33 = vpop.xlane.xlu0 %2556 }
 0xacf   :  { %4301 = vrcp.f32 %v2557_v33 }
 0xad0   :  { %v2626_v62 = vpop.permute.xlu1 %2625 }
 0xad2   :  { %v5062_v47 = vpop.eup %4287  ;;  %v2628_v13 = vpop.permute.xlu0 %2627 }
 0xad3   :  { %4123 = vmatprep.subr.mxu0 %v2628_v13  ;;  %v2564_v52 = vsel %vm37_vm0, %v5062_v47, 0.0 }
 0xad4   :  { %v5066_v61 = vpop.eup %4289  ;;  %4124 = vmatpush3.msra.mxu0 %v2628_v13  ;;  %2565 = vadd.xlane.f32.xlu1 %v2564_v52  ;;  %v2624_v63 = vpop.permute.xlu1 %2623  ;;  %v2596_v13 = vld [vmem:[#allocation4 + $0x38] sm:$0xff] }
 0xad5   :  { %4125 = vmatprep.subr.mxu0 %v2626_v62  ;;  %v2561_v50 = vsel %vm37_vm0, %v5066_v61, 0.0 }
 0xad6   :  { %v5070_v35 = vpop.eup %4291  ;;  %2562 = vadd.xlane.f32.xlu0 %v2561_v50  ;;  %v2622_v10 = vpop.permute.xlu0 %2621  ;;  %4126 = vmatpush3.msra.mxu0 %v2626_v62 }
 0xad7   :  { %v4294_v5 = vpop.eup %4293  ;;  %4127 = vmatprep.subr.mxu0 %v2624_v63  ;;  %v2570_v37 = vsel %vm37_vm0, %v5070_v35, 0.0 }
 0xad8   :  { %v5074_v8 = vpop.eup %4295  ;;  %v2576_v57 = vmul.f32 %v4294_v5, %v5033_v19  ;;  %2571 = vadd.xlane.f32.xlu1 %v2570_v37  ;;  %4128 = vmatpush3.msra.mxu0 %v2624_v63  ;;  %v2737_v6 = vpop.permute.xlu1 %2736  ;;  %v2595_v63 = vld [vmem:[#allocation4 + $0x30] sm:$0xff] }
 0xad9   :  { %v4298_v45 = vpop.eup %4297  ;;  %4129 = vmatprep.subr.mxu0 %v2622_v10  ;;  %4137 = vmatprep.subr.mxu1 %v2737_v6  ;;  %v2567_v11 = vsel %vm37_vm0, %v5074_v8, 0.0 }
 0xada   :  { %v4300_v34 = vpop.eup %4299  ;;  %v2598_v40 = vmul.f32 0.25, %v2576_v57  ;;  %2568 = vadd.xlane.f32.xlu0 %v2567_v11  ;;  %v2735_v58 = vpop.permute.xlu0 %2734  ;;  %4130 = vmatpush3.msra.mxu0 %v2622_v10  ;;  %v2574_v41 = vmul.f32 %v4298_v45, %v5036_v20  ;;  %v4370_v11 = vmov 1966171168  }
 0xadb   :  { %4138 = vmatpush3.msra.mxu1 %v2737_v6  ;;  %v2580_v36 = vmul.f32 %v4300_v34, %v5040_v9  ;;  %v2997_v34 = vunpack.c.l.s4 %v4370_v11 }
 0xadc   :  { %v4302_v15 = vpop.eup %4301  ;;  %v2606_v17 = vadd.f32 %v2598_v40, %v2590_v51  ;;  %v2597_v38 = vmul.f32 0.25, %v2574_v41  ;;  %4131 = vmatprep.mubr.msk.f32.mxu0 %vm37_vm0, %v2574_v41  ;;  %4139 = vmatprep.subr.mxu1 %v2735_v58  ;;  %v2999_v40 = vlaneseq }
 0xadd   :  { %4132 = vmatmul.mubr.msk.f32.vlgmr.msra.gmra.mxu0 %vm37_vm0, %v2576_v57  ;;  %4140 = vmatpush3.msra.mxu1 %v2735_v58  ;;  %v2578_v2 = vmul.f32 %v4302_v15, %v5044_v26  ;;  %v2600_v43 = vmul.f32 0.25, %v2580_v36  ;;  %v4313_v26 = vld [vmem:[%s5264_s2] ss:$0 sm:$0xff]  ;;  %v2998_v58 = vunpack.c.0.s8 %v2997_v34  ;;  %s3537_s2 = sshll.u32 %s4371_s1, 4  ;;  %s3538_s2 = int_to_ptr.vmem [resolvable:$true] %s3537_s2 }
 0xade   :  { %2614 = vst.msk [vmem:[#allocation4 + $0x8] sm:$0xff] %vm37_vm0, %v2606_v17  ;;  %v2605_v19 = vadd.f32 %v2597_v38, %v2589_v54  ;;  %v3000_v41 = vshrl.u32 %v2999_v40, 7  ;;  %s4314_s6 = scalar_lea.vmem %s3538_s2, 1024  ;;  %p4319_p1 = scmp.lt.s32.totalorder %s3538_s2, %s3538_s2 }
 0xadf   :  { %v2599_v56 = vmul.f32 0.25, %v2578_v2  ;;  %4134 = vmatprep.mubr.msk.f32.mxu0 %vm37_vm0, %v2578_v2  ;;  %v2608_v20 = vadd.f32 %v2600_v43, %v2592_v39  ;;  %p4315_p0 = scmp.ne.s32.totalorder %s3538_s2, %s4314_s6  ;;  %p4320_p2 = scmp.lt.s32.totalorder %s4314_s6, %s4314_s6 }
 0xae0   :  { %2613 = vst.msk [vmem:[#allocation4] sm:$0xff] %vm37_vm0, %v2605_v19  ;;  %v5125_v17 = vsub.s32 %v2998_v58, %v3000_v41 }
 0xae1   :  { %v2607_v9 = vadd.f32 %v2599_v56, %v2591_v22  ;;  %2616 = vst.msk [vmem:[#allocation4 + $0x18] sm:$0xff] %vm37_vm0, %v2608_v20  ;;  %4135 = vmatmul.mubr.msk.f32.gmra.mxu0 %vm37_vm0, %v2580_v36  ;;  %p4321_p3 = por %p4320_p2, %p4319_p1 }
 0xae3   :  { %2615 = vst.msk [vmem:[#allocation4 + $0x10] sm:$0xff] %vm37_vm0, %v2607_v9  ;;  %p4322_p4 = pnand %p4321_p3, %p4315_p0 }
 0xae9   :  { %2732 = vrot.lane.b32.xlu1 %v4477_v27, %s4369_s27 }
 0xaed   :  { %2840 = vrot.lane.b32.xlu1 %v4312_v24, %s4364_s20 }
 0xaf0   :  { %2730 = vrot.lane.b32.xlu0 %v4468_v23, %s4369_s27 }
 0xaf4   :  { %2980 = vrot.lane.b32.xlu0 %v4313_v26, %s4364_s20 }
 0xb5d   :  { %v2566_v29 = vpop.xlane.xlu1 %2565 }
 0xb5e   :  { %4303 = vrcp.f32 %v2566_v29 }
 0xb5f   :  { %v2563_v42 = vpop.xlane.xlu0 %2562 }
 0xb60   :  { %4305 = vrcp.f32 %v2563_v42 }
 0xb61   :  { %v2572_v27 = vpop.xlane.xlu1 %2571 }
 0xb62   :  { %4307 = vrcp.f32 %v2572_v27 }
 0xb63   :  { %v2569_v46 = vpop.xlane.xlu0 %2568 }
 0xb64   :  { %4309 = vrcp.f32 %v2569_v46 }
 0xb65   :  { %v2733_v49 = vpop.permute.xlu1 %2732 }
 0xb66   :  { %4141 = vmatprep.subr.mxu1 %v2733_v49 }
 0xb67   :  { %v2731_v48 = vpop.permute.xlu0 %2730  ;;  %4142 = vmatpush3.msra.mxu1 %v2733_v49 }
 0xb68   :  { %4143 = vmatprep.subr.mxu1 %v2731_v48 }
 0xb69   :  { %4144 = vmatpush3.msra.mxu1 %v2731_v48  ;;  %v2841_v23 = vpop.permute.xlu1 %2840 }
 0xb6a   :  { %4151 = vmatprep.subr.mxu0 %v2841_v23 }
 0xb6b   :  { %v4304_v60 = vpop.eup %4303  ;;  %4152 = vmatpush3.msra.mxu0 %v2841_v23  ;;  %v5122_v36 = vpop.permute.xlu0 %2980 }
 0xb6c   :  { %v2584_v21 = vmul.f32 %v4304_v60, %v5062_v47 }
 0xb6d   :  { %v4306_v0 = vpop.eup %4305 }
 0xb6e   :  { %v2602_v14 = vmul.f32 0.25, %v2584_v21  ;;  %v2582_v30 = vmul.f32 %v4306_v0, %v5066_v61 }
 0xb6f   :  { %v4308_v59 = vpop.eup %4307 }
 0xb70   :  { %v2610_v12 = vadd.f32 %v2602_v14, %v2594_v18  ;;  %v2601_v25 = vmul.f32 0.25, %v2582_v30  ;;  %4145 = vmatprep.mubr.msk.f32.mxu1 %vm37_vm0, %v2582_v30  ;;  %v2588_v31 = vmul.f32 %v4308_v59, %v5070_v35 }
 0xb71   :  { %v4310_v16 = vpop.eup %4309  ;;  %4146 = vmatmul.mubr.msk.f32.vlgmr.msra.gmra.mxu1 %vm37_vm0, %v2584_v21 }
 0xb72   :  { %2618 = vst.msk [vmem:[#allocation4 + $0x28] sm:$0xff] %vm37_vm0, %v2610_v12  ;;  %v2609_v33 = vadd.f32 %v2601_v25, %v2593_v28  ;;  %v2586_v62 = vmul.f32 %v4310_v16, %v5074_v8  ;;  %v2604_v47 = vmul.f32 0.25, %v2588_v31 }
 0xb74   :  { %2617 = vst.msk [vmem:[#allocation4 + $0x20] sm:$0xff] %vm37_vm0, %v2609_v33  ;;  %v2603_v52 = vmul.f32 0.25, %v2586_v62  ;;  %4148 = vmatprep.mubr.msk.f32.mxu1 %vm37_vm0, %v2586_v62  ;;  %v2612_v61 = vadd.f32 %v2604_v47, %v2596_v13 }
 0xb75   :  { %4149 = vmatmul.mubr.msk.f32.gmra.mxu1 %vm37_vm0, %v2588_v31 }
 0xb76   :  { %v2611_v50 = vadd.f32 %v2603_v52, %v2595_v63  ;;  %2620 = vst.msk [vmem:[#allocation4 + $0x38] sm:$0xff] %vm37_vm0, %v2612_v61 }
 0xb78   :  { %2619 = vst.msk [vmem:[#allocation4 + $0x30] sm:$0xff] %vm37_vm0, %v2611_v50 }
 0xb9d   :  { %v4133_v35 = vpop.f32.mrf.mxu0 }
 0xb9f   :  { %v2711_v10 = vpop.f32.mrf.mxu0 }
 0xba0   :  { %4153 = vmatprep.mubr.msk.f32.mxu0 %vm179_vm1, %v2711_v10 }
 0xba1   :  { %v4136_v5 = vpop.f32.mrf.mxu0  ;;  %4154 = vmatmul.mubr.msk.f32.vlgmr.msra.gmra.mxu0 %vm179_vm1, %v4133_v35 }
 0xba3   :  { %v2721_v37 = vpop.f32.mrf.mxu0 }
 0xba4   :  { %4156 = vmatprep.mubr.msk.f32.mxu0 %vm179_vm1, %v2721_v37 }
 0xba5   :  { %4157 = vmatmul.mubr.msk.f32.gmra.mxu0 %vm179_vm1, %v4136_v5 }
 0xc31   :  { %v4147_v8 = vpop.f32.mrf.mxu1 }
 0xc33   :  { %v2820_v57 = vpop.f32.mrf.mxu1 }
 0xc34   :  { %4159 = vmatprep.mubr.msk.f32.mxu0 %vm179_vm1, %v2820_v57 }
 0xc35   :  { %v4150_v6 = vpop.f32.mrf.mxu1  ;;  %4160 = vmatmul.mubr.msk.f32.gmra.mxu0 %vm179_vm1, %v4147_v8 }
 0xc37   :  { %v2830_v45 = vpop.f32.mrf.mxu1 }
 0xc38   :  { %4162 = vmatprep.mubr.msk.f32.mxu0 %vm179_vm1, %v2830_v45 }
 0xc39   :  { %4163 = vmatmul.mubr.msk.f32.gmra.mxu0 %vm179_vm1, %v4150_v6 }
 0xc61   :  { %v4155_v51 = vpop.f32.mrf.mxu0 }
 0xc62   :  { %v2973_v15 = vadd.f32 %v4155_v51, %v5002_v32 }
 0xc63   :  { %v2933_v38 = vpop.f32.mrf.mxu0 }
 0xc64   :  { %v2984_v54 = vadd.f32 %v5122_v36, %v2973_v15  ;;  %v2972_v2 = vadd.f32 %v2933_v38, %v5006_v55 }
 0xc65   :  { %v4158_v43 = vpop.f32.mrf.mxu0 }
 0xc66   :  { %v3044_v19 = vcombine.high %v2984_v54, %v2984_v54  ;;  %v3051_v39 = vrot.slane %v2984_v54, %v5125_v17  ;;  %v2983_v56 = vadd.f32 %v5122_v36, %v2972_v2  ;;  %v2975_v20 = vadd.f32 %v4158_v43, %v5010_v1 }
 0xc67   :  { %v2943_v22 = vpop.f32.mrf.mxu0 }
 0xc68   :  { %v3058_v9 = vrot.slane %v3044_v19, %v5125_v17  ;;  %v3059_v32 = vcombine.high %v3051_v39, %v3051_v39  ;;  %v3067_v24 = vrot.slane %v3051_v39, %v5125_v17  ;;  %v2995_v26 = vcombine.high %v2983_v56, %v2983_v56 }
 0xc69   :  { %v3002_v29 = vrot.slane %v2983_v56, %v5125_v17  ;;  %v2986_v55 = vadd.f32 %v5122_v36, %v2975_v20  ;;  %v2974_v42 = vadd.f32 %v2943_v22, %v5014_v3 }
 0xc6a   :  { %v3060_v27 = vcombine.high %v3058_v9, %v3058_v9  ;;  %v3074_v46 = vrot.slane %v3058_v9, %v5125_v17  ;;  %v3081_v49 = vrot.slane %v3059_v32, %v5125_v17  ;;  %v3089_v1 = vcombine.high %v3067_v24, %v3067_v24  ;;  %3232 = vst.msk [vmem:[#allocation2 + $0x10] sm:$0x1] %vm3223_vm2, %v3067_v24 }
 0xc6b   :  { %v3009_v48 = vrot.slane %v2995_v26, %v5125_v17  ;;  %v3010_v23 = vcombine.high %v3002_v29, %v3002_v29  ;;  %v3018_v60 = vrot.slane %v3002_v29, %v5125_v17  ;;  %v3142_v21 = vcombine.high %v2986_v55, %v2986_v55 }
 0xc6c   :  { %v3088_v0 = vrot.slane %v3060_v27, %v5125_v17  ;;  %v3090_v14 = vcombine.high %v3074_v46, %v3074_v46  ;;  %v3091_v30 = vcombine.high %v3081_v49, %v3081_v49  ;;  %3233 = vst.msk [vmem:[#allocation2 + $0x12] sm:$0x1] %vm3223_vm2, %v3081_v49  ;;  %3234 = vst.msk [vmem:[#allocation2 + $0x14] sm:$0x1] %vm3223_vm2, %v3089_v1 }
 0xc6d   :  { %3236 = vst.msk [vmem:[#allocation2 + $0x18] sm:$0x1] %vm3223_vm2, %v3074_v46  ;;  %v3149_v3 = vrot.slane %v2986_v55, %v5125_v17  ;;  %v3011_v59 = vcombine.high %v3009_v48, %v3009_v48  ;;  %v3025_v18 = vrot.slane %v3009_v48, %v5125_v17  ;;  %v3032_v12 = vrot.slane %v3010_v23, %v5125_v17 }
 0xc6e   :  { %v3040_v25 = vcombine.high %v3018_v60, %v3018_v60  ;;  %3224 = vst.msk [vmem:[#allocation2] sm:$0x1] %vm3223_vm2, %v3018_v60  ;;  %v3092_v31 = vcombine.high %v3088_v0, %v3088_v0  ;;  %3235 = vst.msk [vmem:[#allocation2 + $0x16] sm:$0x1] %vm3223_vm2, %v3091_v30  ;;  %v3156_v16 = vrot.slane %v3142_v21, %v5125_v17 }
 0xc6f   :  { %3237 = vst.msk [vmem:[#allocation2 + $0x1a] sm:$0x1] %vm3223_vm2, %v3088_v0  ;;  %3238 = vst.msk [vmem:[#allocation2 + $0x1c] sm:$0x1] %vm3223_vm2, %v3090_v14  ;;  %v3157_v28 = vcombine.high %v3149_v3, %v3149_v3  ;;  %v3165_v33 = vrot.slane %v3149_v3, %v5125_v17  ;;  %v3039_v62 = vrot.slane %v3011_v59, %v5125_v17 }
 0xc70   :  { %v3041_v47 = vcombine.high %v3025_v18, %v3025_v18  ;;  %v3042_v13 = vcombine.high %v3032_v12, %v3032_v12  ;;  %3225 = vst.msk [vmem:[#allocation2 + $0x2] sm:$0x1] %vm3223_vm2, %v3032_v12  ;;  %3226 = vst.msk [vmem:[#allocation2 + $0x4] sm:$0x1] %vm3223_vm2, %v3040_v25  ;;  %v2985_v52 = vadd.f32 %v5122_v36, %v2974_v42 }
 0xc71   :  { %3228 = vst.msk [vmem:[#allocation2 + $0x8] sm:$0x1] %vm3223_vm2, %v3025_v18  ;;  %3239 = vst.msk [vmem:[#allocation2 + $0x1e] sm:$0x1] %vm3223_vm2, %v3092_v31  ;;  %v3158_v61 = vcombine.high %v3156_v16, %v3156_v16  ;;  %v3172_v63 = vrot.slane %v3156_v16, %v5125_v17  ;;  %v3179_v50 = vrot.slane %v3157_v28, %v5125_v17 }
 0xc72   :  { %v3187_v35 = vcombine.high %v3165_v33, %v3165_v33  ;;  %3248 = vst.msk [vmem:[#allocation2 + $0x30] sm:$0x1] %vm3223_vm2, %v3165_v33  ;;  %v3043_v10 = vcombine.high %v3039_v62, %v3039_v62  ;;  %3227 = vst.msk [vmem:[#allocation2 + $0x6] sm:$0x1] %vm3223_vm2, %v3042_v13  ;;  %v3093_v5 = vcombine.high %v2985_v52, %v2985_v52 }
 0xc73   :  { %3229 = vst.msk [vmem:[#allocation2 + $0xa] sm:$0x1] %vm3223_vm2, %v3039_v62  ;;  %3230 = vst.msk [vmem:[#allocation2 + $0xc] sm:$0x1] %vm3223_vm2, %v3041_v47  ;;  %v3100_v37 = vrot.slane %v2985_v52, %v5125_v17  ;;  %v3186_v8 = vrot.slane %v3158_v61, %v5125_v17  ;;  %v3188_v57 = vcombine.high %v3172_v63, %v3172_v63 }
 0xc74   :  { %v3189_v6 = vcombine.high %v3179_v50, %v3179_v50  ;;  %3249 = vst.msk [vmem:[#allocation2 + $0x32] sm:$0x1] %vm3223_vm2, %v3179_v50  ;;  %3250 = vst.msk [vmem:[#allocation2 + $0x34] sm:$0x1] %vm3223_vm2, %v3187_v35  ;;  %v3107_v45 = vrot.slane %v3093_v5, %v5125_v17 }
 0xc75   :  { %3252 = vst.msk [vmem:[#allocation2 + $0x38] sm:$0x1] %vm3223_vm2, %v3172_v63  ;;  %3231 = vst.msk [vmem:[#allocation2 + $0xe] sm:$0x1] %vm3223_vm2, %v3043_v10  ;;  %v3108_v11 = vcombine.high %v3100_v37, %v3100_v37  ;;  %v3116_v34 = vrot.slane %v3100_v37, %v5125_v17  ;;  %v3190_v40 = vcombine.high %v3186_v8, %v3186_v8 }
 0xc76   :  { %3251 = vst.msk [vmem:[#allocation2 + $0x36] sm:$0x1] %vm3223_vm2, %v3189_v6  ;;  %3253 = vst.msk [vmem:[#allocation2 + $0x3a] sm:$0x1] %vm3223_vm2, %v3186_v8  ;;  %v3109_v58 = vcombine.high %v3107_v45, %v3107_v45  ;;  %v3123_v41 = vrot.slane %v3107_v45, %v5125_v17 }
 0xc77   :  { %3254 = vst.msk [vmem:[#allocation2 + $0x3c] sm:$0x1] %vm3223_vm2, %v3188_v57  ;;  %v3130_v51 = vrot.slane %v3108_v11, %v5125_v17  ;;  %v3138_v15 = vcombine.high %v3116_v34, %v3116_v34  ;;  %3240 = vst.msk [vmem:[#allocation2 + $0x20] sm:$0x1] %vm3223_vm2, %v3116_v34 }
 0xc78   :  { %3255 = vst.msk [vmem:[#allocation2 + $0x3e] sm:$0x1] %vm3223_vm2, %v3190_v40  ;;  %v3137_v38 = vrot.slane %v3109_v58, %v5125_v17  ;;  %v3139_v54 = vcombine.high %v3123_v41, %v3123_v41  ;;  %3244 = vst.msk [vmem:[#allocation2 + $0x28] sm:$0x1] %vm3223_vm2, %v3123_v41 }
 0xc79   :  { %v3140_v2 = vcombine.high %v3130_v51, %v3130_v51  ;;  %3241 = vst.msk [vmem:[#allocation2 + $0x22] sm:$0x1] %vm3223_vm2, %v3130_v51  ;;  %3242 = vst.msk [vmem:[#allocation2 + $0x24] sm:$0x1] %vm3223_vm2, %v3138_v15 }
 0xc7a   :  { %v3141_v43 = vcombine.high %v3137_v38, %v3137_v38  ;;  %3245 = vst.msk [vmem:[#allocation2 + $0x2a] sm:$0x1] %vm3223_vm2, %v3137_v38  ;;  %3246 = vst.msk [vmem:[#allocation2 + $0x2c] sm:$0x1] %vm3223_vm2, %v3139_v54 }
 0xc7b   :  { %3243 = vst.msk [vmem:[#allocation2 + $0x26] sm:$0x1] %vm3223_vm2, %v3140_v2 }
 0xc7c   :  { %3247 = vst.msk [vmem:[#allocation2 + $0x2e] sm:$0x1] %vm3223_vm2, %v3141_v43 }
 0xc7d   :  { %4325 = shalt.err (!%p4322_p4)
}
 0xc7e   :  { %s4372_s7 = smov 128   ;;  %s4373_s8 = smov 8  }
 0xc7f   :  { %3543 = dma.vmem_to_hbm [thread:$0]  %s3538_s2, 1024, %s5266_s4, [#allocation5], %s4372_s7, %s4372_s7, %s4373_s8  }
 0xc80   :  { %s4374_s4 = smov [#allocation2]  }
 0xc81   :  { %s3525_s11 = sshll.u32 %s4374_s4, 4  ;;  %s3526_s11 = int_to_ptr.vmem [resolvable:$true] %s3525_s11 }
 0xc82   :  { %s4334_s12 = scalar_lea.vmem %s3526_s11, 1024  ;;  %p4339_p6 = scmp.lt.s32.totalorder %s3526_s11, %s3526_s11 }
 0xc83   :  { %p4335_p5 = scmp.ne.s32.totalorder %s3526_s11, %s4334_s12  ;;  %p4340_p7 = scmp.lt.s32.totalorder %s4334_s12, %s4334_s12 }
 0xc85   :  { %p4341_p8 = por %p4340_p7, %p4339_p6 }
 0xc87   :  { %p4342_p9 = pnand %p4341_p8, %p4335_p5 }
 0xcf5   :  { %v4161_v19 = vpop.f32.mrf.mxu0 }
 0xcf6   :  { %v2977_v39 = vadd.f32 %v4161_v19, %v5018_v7 }
 0xcf7   :  { %v2953_v56 = vpop.f32.mrf.mxu0 }
 0xcf8   :  { %v2988_v20 = vadd.f32 %v5122_v36, %v2977_v39  ;;  %v2976_v22 = vadd.f32 %v2953_v56, %v5022_v44 }
 0xcf9   :  { %v4164_v9 = vpop.f32.mrf.mxu0 }
 0xcfa   :  { %v3309_v32 = vcombine.high %v2988_v20, %v2988_v20  ;;  %v3316_v24 = vrot.slane %v2988_v20, %v5125_v17  ;;  %v2987_v26 = vadd.f32 %v5122_v36, %v2976_v22  ;;  %v2979_v29 = vadd.f32 %v4164_v9, %v5026_v4 }
 0xcfb   :  { %v2963_v55 = vpop.f32.mrf.mxu0 }
 0xcfc   :  { %v3323_v42 = vrot.slane %v3309_v32, %v5125_v17  ;;  %v3324_v27 = vcombine.high %v3316_v24, %v3316_v24  ;;  %v3332_v46 = vrot.slane %v3316_v24, %v5125_v17  ;;  %v3260_v7 = vcombine.high %v2987_v26, %v2987_v26 }
 0xcfd   :  { %v3267_v49 = vrot.slane %v2987_v26, %v5125_v17  ;;  %v2990_v1 = vadd.f32 %v5122_v36, %v2979_v29  ;;  %v2978_v44 = vadd.f32 %v2963_v55, %v5028_v53 }
 0xcfe   :  { %v3325_v48 = vcombine.high %v3323_v42, %v3323_v42  ;;  %v3339_v23 = vrot.slane %v3323_v42, %v5125_v17  ;;  %v3346_v60 = vrot.slane %v3324_v27, %v5125_v17  ;;  %v3354_v21 = vcombine.high %v3332_v46, %v3332_v46  ;;  %3496 = vst.msk [vmem:[#allocation2 + $0x11] sm:$0x1] %vm3223_vm2, %v3332_v46 }
 0xcff   :  { %v3274_v4 = vrot.slane %v3260_v7, %v5125_v17  ;;  %v3275_v0 = vcombine.high %v3267_v49, %v3267_v49  ;;  %v3283_v14 = vrot.slane %v3267_v49, %v5125_v17  ;;  %v3407_v30 = vcombine.high %v2990_v1, %v2990_v1 }
 0xd00   :  { %v3353_v3 = vrot.slane %v3325_v48, %v5125_v17  ;;  %v3355_v59 = vcombine.high %v3339_v23, %v3339_v23  ;;  %v3356_v18 = vcombine.high %v3346_v60, %v3346_v60  ;;  %3497 = vst.msk [vmem:[#allocation2 + $0x13] sm:$0x1] %vm3223_vm2, %v3346_v60  ;;  %3498 = vst.msk [vmem:[#allocation2 + $0x15] sm:$0x1] %vm3223_vm2, %v3354_v21 }
 0xd01   :  { %3500 = vst.msk [vmem:[#allocation2 + $0x19] sm:$0x1] %vm3223_vm2, %v3339_v23  ;;  %v3414_v53 = vrot.slane %v2990_v1, %v5125_v17  ;;  %v3276_v12 = vcombine.high %v3274_v4, %v3274_v4  ;;  %v3290_v25 = vrot.slane %v3274_v4, %v5125_v17  ;;  %v3297_v31 = vrot.slane %v3275_v0, %v5125_v17 }
 0xd02   :  { %v3305_v16 = vcombine.high %v3283_v14, %v3283_v14  ;;  %3488 = vst.msk [vmem:[#allocation2 + $0x1] sm:$0x1] %vm3223_vm2, %v3283_v14  ;;  %v3357_v28 = vcombine.high %v3353_v3, %v3353_v3  ;;  %3499 = vst.msk [vmem:[#allocation2 + $0x17] sm:$0x1] %vm3223_vm2, %v3356_v18  ;;  %v3421_v33 = vrot.slane %v3407_v30, %v5125_v17 }
 0xd03   :  { %3501 = vst.msk [vmem:[#allocation2 + $0x1b] sm:$0x1] %vm3223_vm2, %v3353_v3  ;;  %3502 = vst.msk [vmem:[#allocation2 + $0x1d] sm:$0x1] %vm3223_vm2, %v3355_v59  ;;  %v3422_v62 = vcombine.high %v3414_v53, %v3414_v53  ;;  %v3430_v47 = vrot.slane %v3414_v53, %v5125_v17  ;;  %v3304_v13 = vrot.slane %v3276_v12, %v5125_v17 }
 0xd04   :  { %v3306_v52 = vcombine.high %v3290_v25, %v3290_v25  ;;  %v3307_v61 = vcombine.high %v3297_v31, %v3297_v31  ;;  %3489 = vst.msk [vmem:[#allocation2 + $0x3] sm:$0x1] %vm3223_vm2, %v3297_v31  ;;  %3490 = vst.msk [vmem:[#allocation2 + $0x5] sm:$0x1] %vm3223_vm2, %v3305_v16  ;;  %v2989_v63 = vadd.f32 %v5122_v36, %v2978_v44 }
 0xd05   :  { %3492 = vst.msk [vmem:[#allocation2 + $0x9] sm:$0x1] %vm3223_vm2, %v3290_v25  ;;  %3503 = vst.msk [vmem:[#allocation2 + $0x1f] sm:$0x1] %vm3223_vm2, %v3357_v28  ;;  %v3423_v50 = vcombine.high %v3421_v33, %v3421_v33  ;;  %v3437_v35 = vrot.slane %v3421_v33, %v5125_v17  ;;  %v3444_v10 = vrot.slane %v3422_v62, %v5125_v17 }
 0xd06   :  { %v3452_v5 = vcombine.high %v3430_v47, %v3430_v47  ;;  %3512 = vst.msk [vmem:[#allocation2 + $0x31] sm:$0x1] %vm3223_vm2, %v3430_v47  ;;  %v3308_v37 = vcombine.high %v3304_v13, %v3304_v13  ;;  %3491 = vst.msk [vmem:[#allocation2 + $0x7] sm:$0x1] %vm3223_vm2, %v3307_v61  ;;  %v3358_v8 = vcombine.high %v2989_v63, %v2989_v63 }
 0xd07   :  { %3493 = vst.msk [vmem:[#allocation2 + $0xb] sm:$0x1] %vm3223_vm2, %v3304_v13  ;;  %3494 = vst.msk [vmem:[#allocation2 + $0xd] sm:$0x1] %vm3223_vm2, %v3306_v52  ;;  %v3365_v36 = vrot.slane %v2989_v63, %v5125_v17  ;;  %v3451_v57 = vrot.slane %v3423_v50, %v5125_v17  ;;  %v3453_v6 = vcombine.high %v3437_v35, %v3437_v35 }
 0xd08   :  { %v3454_v45 = vcombine.high %v3444_v10, %v3444_v10  ;;  %3513 = vst.msk [vmem:[#allocation2 + $0x33] sm:$0x1] %vm3223_vm2, %v3444_v10  ;;  %3514 = vst.msk [vmem:[#allocation2 + $0x35] sm:$0x1] %vm3223_vm2, %v3452_v5  ;;  %v3372_v11 = vrot.slane %v3358_v8, %v5125_v17 }
 0xd09   :  { %3516 = vst.msk [vmem:[#allocation2 + $0x39] sm:$0x1] %vm3223_vm2, %v3437_v35  ;;  %3495 = vst.msk [vmem:[#allocation2 + $0xf] sm:$0x1] %vm3223_vm2, %v3308_v37  ;;  %v3373_v34 = vcombine.high %v3365_v36, %v3365_v36  ;;  %v3381_v40 = vrot.slane %v3365_v36, %v5125_v17  ;;  %v3455_v58 = vcombine.high %v3451_v57, %v3451_v57 }
 0xd0a   :  { %3515 = vst.msk [vmem:[#allocation2 + $0x37] sm:$0x1] %vm3223_vm2, %v3454_v45  ;;  %3517 = vst.msk [vmem:[#allocation2 + $0x3b] sm:$0x1] %vm3223_vm2, %v3451_v57  ;;  %v3374_v41 = vcombine.high %v3372_v11, %v3372_v11  ;;  %v3388_v51 = vrot.slane %v3372_v11, %v5125_v17 }
 0xd0b   :  { %3518 = vst.msk [vmem:[#allocation2 + $0x3d] sm:$0x1] %vm3223_vm2, %v3453_v6  ;;  %v3395_v15 = vrot.slane %v3373_v34, %v5125_v17  ;;  %v3403_v38 = vcombine.high %v3381_v40, %v3381_v40  ;;  %3504 = vst.msk [vmem:[#allocation2 + $0x21] sm:$0x1] %vm3223_vm2, %v3381_v40 }
 0xd0c   :  { %3519 = vst.msk [vmem:[#allocation2 + $0x3f] sm:$0x1] %vm3223_vm2, %v3455_v58  ;;  %v3402_v54 = vrot.slane %v3374_v41, %v5125_v17  ;;  %v3404_v2 = vcombine.high %v3388_v51, %v3388_v51  ;;  %3508 = vst.msk [vmem:[#allocation2 + $0x29] sm:$0x1] %vm3223_vm2, %v3388_v51 }
 0xd0d   :  { %v3405_v43 = vcombine.high %v3395_v15, %v3395_v15  ;;  %3505 = vst.msk [vmem:[#allocation2 + $0x23] sm:$0x1] %vm3223_vm2, %v3395_v15  ;;  %3506 = vst.msk [vmem:[#allocation2 + $0x25] sm:$0x1] %vm3223_vm2, %v3403_v38 }
 0xd0e   :  { %v3406_v19 = vcombine.high %v3402_v54, %v3402_v54  ;;  %3509 = vst.msk [vmem:[#allocation2 + $0x2b] sm:$0x1] %vm3223_vm2, %v3402_v54  ;;  %3510 = vst.msk [vmem:[#allocation2 + $0x2d] sm:$0x1] %vm3223_vm2, %v3404_v2 }
 0xd0f   :  { %3507 = vst.msk [vmem:[#allocation2 + $0x27] sm:$0x1] %vm3223_vm2, %v3405_v43 }
 0xd10   :  { %3511 = vst.msk [vmem:[#allocation2 + $0x2f] sm:$0x1] %vm3223_vm2, %v3406_v19 }
 0xd11   :  { %4345 = shalt.err (!%p4342_p9)
}
 0xd12   :  { %s4375_s13 = smov 2  }
 0xd13   :  { %3531 = dma.vmem_to_hbm [thread:$0]  %s3526_s11, 1024, %s5265_s3, [#allocation3], %s4364_s20, %s4364_s20, %s4375_s13  }
 0xd14   :  { %4354 = dma.done.wait [#allocation3], 1024  }
 0xd15   :  { %4355 = vsyncadd [#allocation3], 4294966272 }
 0xd16   :  { %4356 = dma.done.wait [#allocation5], 1024  }
 0xd17   :  { %4357 = vsyncadd [#allocation5], 4294966272 }
 0xd18   :  { %3550 = vsyncpa [#allocation3], 1 }
 0xd19   :  { %3551 = vsyncpa [#allocation5], 1 }

</bundles_post_ra>
